<compile_context>
chip_gen: v7x
topology: tpu7x:2x2x1
jax: 0.10.0
libtpu: 0.0.40
codegen_flags: <defaults>
</compile_context>

<pallas_src>
import math
from functools import partial

import jax
import jax.numpy as jnp
from jax import lax
from jax.experimental import pallas as pl
from jax.experimental.pallas import tpu as pltpu

LN_EPS = 1e-12                                # espnet LayerNorm eps
NEG_INF = jnp.finfo(jnp.float32).min
# Matmul-operand dtype hook.  Flip to jnp.bfloat16 on v6e/v7x for MXU throughput
# (accumulation stays float32 via preferred_element_type).  Default f32 to track the
# PyTorch reference numerics.
MXU_DTYPE = jnp.float32


def _mx(x):
    return x.astype(MXU_DTYPE)


def _layernorm(x, g, b):
    mu = jnp.mean(x, axis=-1, keepdims=True)
    xc = x - mu
    var = jnp.mean(xc * xc, axis=-1, keepdims=True)
    return xc * lax.rsqrt(var + LN_EPS) * g + b


# ----------------------------- Pallas kernels ------------------------------

def _attn_block_kernel(h_ref, mask_ref, lng_ref, lnb_ref, wqkv_ref, bqkv_ref,
                       pos_ref, wpos_ref, pbu_ref, pbv_ref, wo_ref, bo_ref,
                       o_ref, *, heads, scale):
    """Whole MHA sub-layer (pre-norm, rel-pos attention, out-proj, residual) for one batch."""
    T, d = h_ref.shape[1], h_ref.shape[2]
    dk = d // heads

    h = h_ref[0]                                                  # (T, d) residual stream
    hn = _layernorm(h, lng_ref[...], lnb_ref[...])                # pre-norm

    # fused QKV projection: one lane-dense (T, 3d) matmul
    qkv = jnp.dot(_mx(hn), _mx(wqkv_ref[...]),
                  preferred_element_type=jnp.float32) + bqkv_ref[...]
    q = qkv[:, 0:d]
    k = qkv[:, d:2 * d]
    v = qkv[:, 2 * d:3 * d]

    # positional projection p = pos_emb @ Wpos  (2T-1, d), kept in VMEM
    p = jnp.dot(_mx(pos_ref[...]), _mx(wpos_ref[...]),
                preferred_element_type=jnp.float32)

    # pos_bias_u / pos_bias_v added in-kernel (heads packed along the lane axis)
    q_u = q + pbu_ref[...]
    q_v = q + pbv_ref[...]

    key_valid = mask_ref[0] > 0.0                                 # (1, T) -> broadcasts over queries

    ctx = []
    for hd in range(heads):                                       # static unroll (heads is small)
        sl = slice(hd * dk, (hd + 1) * dk)
        qh_u, qh_v = q_u[:, sl], q_v[:, sl]
        kh, vh, ph = k[:, sl], v[:, sl], p[:, sl]

        # content term (q + u) @ k^T  (MXU)
        ac = lax.dot_general(_mx(qh_u), _mx(kh), (((1,), (1,)), ((), ())),
                             preferred_element_type=jnp.float32)          # (T, T)
        # positional term (q + v) @ p^T  (MXU) -> (T, 2T-1), then rel_shift in-kernel
        bdf = lax.dot_general(_mx(qh_v), _mx(ph), (((1,), (1,)), ((), ())),
                              preferred_element_type=jnp.float32)         # (T, 2T-1)
        # rel_shift: bd[i, j] = bdf[i, (T-1) - i + j]  (static per-row slices; T is a small
        # compile-time constant here.  For large T the scalable form is
        # pltpu.roll(bdf, -(T-1), axis=1, stride=1, stride_axis=0)[:, :T].)
        bd = jnp.concatenate(
            [bdf[i:i + 1, T - 1 - i:2 * T - 1 - i] for i in range(T)], axis=0)

        scores = (ac + bd) * scale
        scores = jnp.where(key_valid, scores, NEG_INF)
        m = jnp.max(scores, axis=-1, keepdims=True)
        e = jnp.exp(scores - m)
        attn = e / jnp.sum(e, axis=-1, keepdims=True)
        attn = jnp.where(key_valid, attn, 0.0)

        ctx.append(jnp.dot(_mx(attn), _mx(vh), preferred_element_type=jnp.float32))

    ctx = jnp.concatenate(ctx, axis=1)                            # (T, d)

    # output projection + residual add fused
    out = jnp.dot(_mx(ctx), _mx(wo_ref[...]),
                  preferred_element_type=jnp.float32) + bo_ref[...]
    o_ref[0] = h + out


def _im2col_k3(x):
    # x: (T, C) -> (T, 3C) rows [x[t-1], x[t], x[t+1]] with zero boundary rows (pad=1 "same")
    z = jnp.zeros((1, x.shape[1]), x.dtype)
    xm1 = jnp.concatenate([z, x[:-1]], axis=0)
    xp1 = jnp.concatenate([x[1:], z], axis=0)
    return jnp.concatenate([xm1, x, xp1], axis=1)


def _ff_block_kernel(h_ref, lng_ref, lnb_ref, w1_ref, b1_ref, w2_ref, b2_ref, o_ref):
    """Whole positionwise sub-layer (pre-norm, conv k=3 -> ReLU -> conv k=3, residual)."""
    h = h_ref[0]                                                  # (T, d)
    hn = _layernorm(h, lng_ref[...], lnb_ref[...])
    # conv1d(k=3, pad=1) as a single (T, 3d) @ (3d, lu) matmul (better MXU K-dim) + ReLU
    y = jnp.dot(_mx(_im2col_k3(hn)), _mx(w1_ref[...]),
                preferred_element_type=jnp.float32) + b1_ref[...]
    y = jnp.maximum(y, 0.0)
    # conv1d(k=3, pad=1) as a single (T, 3*lu) @ (3*lu, d) matmul
    y = jnp.dot(_mx(_im2col_k3(y)), _mx(w2_ref[...]),
                preferred_element_type=jnp.float32) + b2_ref[...]
    o_ref[0] = h + y                                              # residual add fused


def _out_block_kernel(h_ref, g_ref, b_ref, w_ref, bias_ref, o_ref):
    """Final LayerNorm + classifier + log_softmax (vocab pre-padded to 128 lanes)."""
    h = h_ref[0]
    hn = _layernorm(h, g_ref[...], b_ref[...])
    # padded vocab columns carry zero weights and a -1e30 bias, so they never perturb
    # the log_softmax of the real columns (their exp underflows to exactly 0).
    logits = jnp.dot(_mx(hn), _mx(w_ref[...]),
                     preferred_element_type=jnp.float32) + bias_ref[...]
    m = jnp.max(logits, axis=-1, keepdims=True)
    z = logits - m
    lse = jnp.log(jnp.sum(jnp.exp(z), axis=-1, keepdims=True))
    o_ref[0] = z - lse


# ----------------------------- wrappers ------------------------------------

def _rep_spec(shape):
    # full-array block, replicated for every batch grid step
    n = len(shape)
    return pl.BlockSpec(shape, lambda b: (0,) * n)


def attn_sublayer(h, x_mask, pos_emb, lp, heads):
    B, T, d = h.shape
    P = pos_emb.shape[0]
    scale = 1.0 / math.sqrt(d // heads)
    return pl.pallas_call(
        partial(_attn_block_kernel, heads=heads, scale=scale),
        out_shape=jax.ShapeDtypeStruct((B, T, d), jnp.float32),
        grid=(B,),
        in_specs=[
            pl.BlockSpec((1, T, d), lambda b: (b, 0, 0)),     # residual stream
            pl.BlockSpec((1, 1, T), lambda b: (b, 0, 0)),     # key mask
            _rep_spec((1, d)), _rep_spec((1, d)),             # norm_mha gamma / beta
            _rep_spec((d, 3 * d)), _rep_spec((1, 3 * d)),     # fused [Wq|Wk|Wv], bias
            _rep_spec((P, d)), _rep_spec((d, d)),             # pos_emb, linear_pos
            _rep_spec((1, d)), _rep_spec((1, d)),             # pos_bias_u, pos_bias_v
            _rep_spec((d, d)), _rep_spec((1, d)),             # linear_out
        ],
        out_specs=pl.BlockSpec((1, T, d), lambda b: (b, 0, 0)),
        compiler_params=pltpu.CompilerParams(dimension_semantics=("parallel",)),
    )(h, x_mask, lp['ln1_g'], lp['ln1_b'], lp['w_qkv'], lp['b_qkv'],
      pos_emb, lp['w_pos'], lp['pos_bias_u'], lp['pos_bias_v'],
      lp['w_o'], lp['b_o'])


def ff_sublayer(h, lp):
    B, T, d = h.shape
    lu = lp['w_conv1'].shape[1]
    return pl.pallas_call(
        _ff_block_kernel,
        out_shape=jax.ShapeDtypeStruct((B, T, d), jnp.float32),
        grid=(B,),
        in_specs=[
            pl.BlockSpec((1, T, d), lambda b: (b, 0, 0)),
            _rep_spec((1, d)), _rep_spec((1, d)),             # norm_ff gamma / beta
            _rep_spec((3 * d, lu)), _rep_spec((1, lu)),       # conv1 (im2col layout)
            _rep_spec((3 * lu, d)), _rep_spec((1, d)),        # conv2 (im2col layout)
        ],
        out_specs=pl.BlockSpec((1, T, d), lambda b: (b, 0, 0)),
        compiler_params=pltpu.CompilerParams(dimension_semantics=("parallel",)),
    )(h, lp['ln2_g'], lp['ln2_b'], lp['w_conv1'], lp['b_conv1'],
      lp['w_conv2'], lp['b_conv2'])


def output_head(h, params):
    B, T, d = h.shape
    Vp = params['w_out'].shape[1]
    return pl.pallas_call(
        _out_block_kernel,
        out_shape=jax.ShapeDtypeStruct((B, T, Vp), jnp.float32),
        grid=(B,),
        in_specs=[
            pl.BlockSpec((1, T, d), lambda b: (b, 0, 0)),
            _rep_spec((1, d)), _rep_spec((1, d)),             # after_norm gamma / beta
            _rep_spec((d, Vp)), _rep_spec((1, Vp)),           # lane-dense classifier
        ],
        out_specs=pl.BlockSpec((1, T, Vp), lambda b: (b, 0, 0)),
        compiler_params=pltpu.CompilerParams(dimension_semantics=("parallel",)),
    )(h, params['ln_f_g'], params['ln_f_b'], params['w_out'], params['b_out'])


# ----------------------------- model glue -----------------------------------

def rel_positional_encoding(T, d):
    # espnet RelPositionalEncoding table for relative positions +(T-1) ... 0 ... -(T-1)
    pos = jnp.arange(T, dtype=jnp.float32)[:, None]
    div = jnp.exp(jnp.arange(0, d, 2, dtype=jnp.float32) * (-math.log(10000.0) / d))
    pe_pos = jnp.zeros((T, d), jnp.float32)
    pe_pos = pe_pos.at[:, 0::2].set(jnp.sin(pos * div))
    pe_pos = pe_pos.at[:, 1::2].set(jnp.cos(pos * div))
    pe_neg = jnp.zeros((T, d), jnp.float32)
    pe_neg = pe_neg.at[:, 0::2].set(jnp.sin(-pos * div))
    pe_neg = pe_neg.at[:, 1::2].set(jnp.cos(-pos * div))
    pe_pos = jnp.flip(pe_pos, axis=0)
    return jnp.concatenate([pe_pos, pe_neg[1:]], axis=0)         # (2T-1, d)


def init_params(key, d, heads, lu, vocabs, blocks):
    keys = iter(jax.random.split(key, 64))

    def w(shape, scl=0.1):
        return jax.random.normal(next(keys), shape, jnp.float32) * scl

    ones = lambda s: jnp.ones(s, jnp.float32)
    zeros = lambda s: jnp.zeros(s, jnp.float32)

    layers = []
    for _ in range(blocks):
        layers.append(dict(
            ln1_g=ones((1, d)), ln1_b=zeros((1, d)),
            # fused [Wq | Wk | Wv]: a torch checkpoint maps by concatenating the three
            # transposed (d, d) linear weights along the output axis.
            w_qkv=w((d, 3 * d)), b_qkv=w((1, 3 * d), 0.01),
            w_pos=w((d, d)),                                     # linear_pos (no bias)
            pos_bias_u=w((1, d)), pos_bias_v=w((1, d)),          # (H, dk) flattened head-major
            w_o=w((d, d)), b_o=w((1, d), 0.01),
            ln2_g=ones((1, d)), ln2_b=zeros((1, d)),
            # conv k=3 weights in im2col layout:
            # torch (Cout, Cin, 3) -> transpose(2, 1, 0) -> reshape(3*Cin, Cout)
            w_conv1=w((3 * d, lu)), b_conv1=w((1, lu), 0.01),
            w_conv2=w((3 * lu, d)), b_conv2=w((1, d), 0.01),
        ))

    # final classifier, vocab padded to the 128-lane width (zero weights, -1e30 bias in pad)
    v_pad = max(128, ((vocabs + 127) // 128) * 128)
    w_out = w((d, vocabs))
    b_out = w((1, vocabs), 0.01)
    w_out_p = jnp.zeros((d, v_pad), jnp.float32).at[:, :vocabs].set(w_out)
    b_out_p = jnp.full((1, v_pad), -1e30, jnp.float32).at[:, :vocabs].set(b_out)

    return dict(layers=layers,
                ln_f_g=ones((1, d)), ln_f_b=zeros((1, d)),
                w_out=w_out_p, b_out=b_out_p)


def phoneme_predictor_forward(params, x, x_mask, *, heads, vocabs):
    # x: (B, C, T)  x_mask: (B, 1, T) float {0, 1}
    B, C, T = x.shape
    d = C
    # one-time input prep (tiny XLA glue): mask, NCT -> NTC, RelPositionalEncoding xscale
    h = jnp.transpose(x * x_mask, (0, 2, 1)) * jnp.float32(math.sqrt(d))
    pos_emb = rel_positional_encoding(T, d)

    for lp in params['layers']:
        h = attn_sublayer(h, x_mask, pos_emb, lp, heads)          # fused MHA sub-layer
        h = ff_sublayer(h, lp)                                    # fused conv FF sub-layer

    logp = output_head(h, params)                                 # (B, T, Vpad)
    logp = logp[:, :, :vocabs]                                    # drop lane padding
    return jnp.transpose(logp, (1, 0, 2))                         # (T, B, vocabs)


# ----------------------------- main -----------------------------------------

if __name__ == "__main__":
    B, C, T = 2, 32, 16          # hidden_channels = attention_dim = 32
    heads, lu, vocabs, blocks = 2, 64, 16, 2

    key = jax.random.PRNGKey(0)
    kx, kp = jax.random.split(key)
    x = jax.random.normal(kx, (B, C, T), jnp.float32)
    lengths = jnp.array([T, 12])
    x_mask = (jnp.arange(T)[None, :] < lengths[:, None]).astype(jnp.float32)[:, None, :]

    params = init_params(kp, C, heads, lu, vocabs, blocks)

    fwd = jax.jit(partial(phoneme_predictor_forward, heads=heads, vocabs=vocabs))
    out = fwd(params, x, x_mask)
    jax.block_until_ready(out)
    assert out.shape == (T, B, vocabs), out.shape
    assert bool(jnp.all(jnp.isfinite(out)))
    print("KERNEL_OK")
</pallas_src>

<mosaic_0001>
module attributes {stable_mosaic.version = 11 : i64} {
  func.func @_attn_block_kernel(%arg0: i32, %arg1: memref<1x16x32xf32, #tpu.memory_space<vmem>>, %arg2: memref<1x1x16xf32, #tpu.memory_space<vmem>>, %arg3: memref<1x32xf32, #tpu.memory_space<vmem>>, %arg4: memref<1x32xf32, #tpu.memory_space<vmem>>, %arg5: memref<32x96xf32, #tpu.memory_space<vmem>>, %arg6: memref<1x96xf32, #tpu.memory_space<vmem>>, %arg7: memref<31x32xf32, #tpu.memory_space<vmem>>, %arg8: memref<32x32xf32, #tpu.memory_space<vmem>>, %arg9: memref<1x32xf32, #tpu.memory_space<vmem>>, %arg10: memref<1x32xf32, #tpu.memory_space<vmem>>, %arg11: memref<32x32xf32, #tpu.memory_space<vmem>>, %arg12: memref<1x32xf32, #tpu.memory_space<vmem>>, %arg13: memref<1x16x32xf32, #tpu.memory_space<vmem>>) attributes {dimension_semantics = [#tpu.dimension_semantics<parallel>], iteration_bounds = array<i64: 2>, scalar_prefetch = 0 : i64, scratch_operands = 0 : i64, tpu.core_type = #tpu.core_type<tc>, window_params = [{transform_indices = @transform_0, window_bounds = array<i64: 1, 16, 32>}, {transform_indices = @transform_1, window_bounds = array<i64: 1, 1, 16>}, {pipeline_mode = #tpu.pipeline_mode<synchronous>, transform_indices = @transform_2, window_bounds = array<i64: 1, 32>}, {pipeline_mode = #tpu.pipeline_mode<synchronous>, transform_indices = @transform_3, window_bounds = array<i64: 1, 32>}, {pipeline_mode = #tpu.pipeline_mode<synchronous>, transform_indices = @transform_4, window_bounds = array<i64: 32, 96>}, {pipeline_mode = #tpu.pipeline_mode<synchronous>, transform_indices = @transform_5, window_bounds = array<i64: 1, 96>}, {pipeline_mode = #tpu.pipeline_mode<synchronous>, transform_indices = @transform_6, window_bounds = array<i64: 31, 32>}, {pipeline_mode = #tpu.pipeline_mode<synchronous>, transform_indices = @transform_7, window_bounds = array<i64: 32, 32>}, {pipeline_mode = #tpu.pipeline_mode<synchronous>, transform_indices = @transform_8, window_bounds = array<i64: 1, 32>}, {pipeline_mode = #tpu.pipeline_mode<synchronous>, transform_indices = @transform_9, window_bounds = array<i64: 1, 32>}, {pipeline_mode = #tpu.pipeline_mode<synchronous>, transform_indices = @transform_10, window_bounds = array<i64: 32, 32>}, {pipeline_mode = #tpu.pipeline_mode<synchronous>, transform_indices = @transform_11, window_bounds = array<i64: 1, 32>}, {transform_indices = @transform_12, window_bounds = array<i64: 1, 16, 32>}]} {
    %c0 = arith.constant 0 : index
    %c0_0 = arith.constant 0 : index
    %c0_1 = arith.constant 0 : index
    %0 = vector.load %arg1[%c0, %c0_0, %c0_1] : memref<1x16x32xf32, #tpu.memory_space<vmem>>, vector<1x16x32xf32>
    %1 = vector.shape_cast %0 : vector<1x16x32xf32> to vector<16x32xf32>
    %c0_2 = arith.constant 0 : index
    %c0_3 = arith.constant 0 : index
    %2 = vector.load %arg3[%c0_2, %c0_3] : memref<1x32xf32, #tpu.memory_space<vmem>>, vector<1x32xf32>
    %c0_4 = arith.constant 0 : index
    %c0_5 = arith.constant 0 : index
    %3 = vector.load %arg4[%c0_4, %c0_5] : memref<1x32xf32, #tpu.memory_space<vmem>>, vector<1x32xf32>
    %cst = arith.constant dense<0.000000e+00> : vector<16xf32>
    %4 = vector.multi_reduction <add>, %1, %cst [1] : vector<16x32xf32> to vector<16xf32>
    %5 = vector.shape_cast %4 : vector<16xf32> to vector<16x1xf32>
    %cst_6 = arith.constant 3.200000e+01 : f32
    %6 = vector.broadcast %cst_6 : f32 to vector<16x1xf32>
    %7 = arith.divf %5, %6 : vector<16x1xf32>
    %8 = vector.broadcast %7 : vector<16x1xf32> to vector<16x32xf32>
    %9 = arith.subf %1, %8 : vector<16x32xf32>
    %10 = arith.mulf %9, %9 : vector<16x32xf32>
    %cst_7 = arith.constant dense<0.000000e+00> : vector<16xf32>
    %11 = vector.multi_reduction <add>, %10, %cst_7 [1] : vector<16x32xf32> to vector<16xf32>
    %12 = vector.shape_cast %11 : vector<16xf32> to vector<16x1xf32>
    %cst_8 = arith.constant 3.200000e+01 : f32
    %13 = vector.broadcast %cst_8 : f32 to vector<16x1xf32>
    %14 = arith.divf %12, %13 : vector<16x1xf32>
    %cst_9 = arith.constant 9.99999996E-13 : f32
    %15 = vector.broadcast %cst_9 : f32 to vector<16x1xf32>
    %16 = arith.addf %14, %15 : vector<16x1xf32>
    %17 = math.rsqrt %16 : vector<16x1xf32>
    %18 = vector.broadcast %17 : vector<16x1xf32> to vector<16x32xf32>
    %19 = arith.mulf %9, %18 : vector<16x32xf32>
    %20 = vector.broadcast %2 : vector<1x32xf32> to vector<16x32xf32>
    %21 = arith.mulf %19, %20 : vector<16x32xf32>
    %22 = vector.broadcast %3 : vector<1x32xf32> to vector<16x32xf32>
    %23 = arith.addf %21, %22 : vector<16x32xf32>
    %c0_10 = arith.constant 0 : index
    %c0_11 = arith.constant 0 : index
    %24 = vector.load %arg5[%c0_10, %c0_11] : memref<32x96xf32, #tpu.memory_space<vmem>>, vector<32x96xf32>
    %cst_12 = arith.constant dense<0.000000e+00> : vector<16x96xf32>
    %25 = tpu.matmul %23, %24, %cst_12 {dimension_numbers = #tpu.dot_dimension_numbers<[1], [0], [0], [1], [0, 0, 1, 1], [], []>} : vector<16x32xf32>, vector<32x96xf32>, vector<16x96xf32> -> vector<16x96xf32>
    %c0_13 = arith.constant 0 : index
    %c0_14 = arith.constant 0 : index
    %26 = vector.load %arg6[%c0_13, %c0_14] : memref<1x96xf32, #tpu.memory_space<vmem>>, vector<1x96xf32>
    %27 = vector.broadcast %26 : vector<1x96xf32> to vector<16x96xf32>
    %28 = arith.addf %25, %27 : vector<16x96xf32>
    %29 = vector.extract_strided_slice %28 {offsets = [0, 0], sizes = [16, 32], strides = [1, 1]} : vector<16x96xf32> to vector<16x32xf32>
    %30 = vector.extract_strided_slice %28 {offsets = [0, 32], sizes = [16, 32], strides = [1, 1]} : vector<16x96xf32> to vector<16x32xf32>
    %31 = vector.extract_strided_slice %28 {offsets = [0, 64], sizes = [16, 32], strides = [1, 1]} : vector<16x96xf32> to vector<16x32xf32>
    %c0_15 = arith.constant 0 : index
    %c0_16 = arith.constant 0 : index
    %32 = vector.load %arg7[%c0_15, %c0_16] : memref<31x32xf32, #tpu.memory_space<vmem>>, vector<31x32xf32>
    %c0_17 = arith.constant 0 : index
    %c0_18 = arith.constant 0 : index
    %33 = vector.load %arg8[%c0_17, %c0_18] : memref<32x32xf32, #tpu.memory_space<vmem>>, vector<32x32xf32>
    %cst_19 = arith.constant dense<0.000000e+00> : vector<31x32xf32>
    %34 = tpu.matmul %32, %33, %cst_19 {dimension_numbers = #tpu.dot_dimension_numbers<[1], [0], [0], [1], [0, 0, 1, 1], [], []>} : vector<31x32xf32>, vector<32x32xf32>, vector<31x32xf32> -> vector<31x32xf32>
    %c0_20 = arith.constant 0 : index
    %c0_21 = arith.constant 0 : index
    %35 = vector.load %arg9[%c0_20, %c0_21] : memref<1x32xf32, #tpu.memory_space<vmem>>, vector<1x32xf32>
    %36 = vector.broadcast %35 : vector<1x32xf32> to vector<16x32xf32>
    %37 = arith.addf %29, %36 : vector<16x32xf32>
    %c0_22 = arith.constant 0 : index
    %c0_23 = arith.constant 0 : index
    %38 = vector.load %arg10[%c0_22, %c0_23] : memref<1x32xf32, #tpu.memory_space<vmem>>, vector<1x32xf32>
    %39 = vector.broadcast %38 : vector<1x32xf32> to vector<16x32xf32>
    %40 = arith.addf %29, %39 : vector<16x32xf32>
    %c0_24 = arith.constant 0 : index
    %c0_25 = arith.constant 0 : index
    %c0_26 = arith.constant 0 : index
    %41 = vector.load %arg2[%c0_24, %c0_25, %c0_26] : memref<1x1x16xf32, #tpu.memory_space<vmem>>, vector<1x1x16xf32>
    %42 = vector.shape_cast %41 : vector<1x1x16xf32> to vector<1x16xf32>
    %cst_27 = arith.constant 0.000000e+00 : f32
    %43 = vector.broadcast %cst_27 : f32 to vector<1x16xf32>
    %44 = arith.cmpf ogt, %42, %43 : vector<1x16xf32>
    %45 = vector.extract_strided_slice %37 {offsets = [0, 0], sizes = [16, 16], strides = [1, 1]} : vector<16x32xf32> to vector<16x16xf32>
    %46 = vector.extract_strided_slice %40 {offsets = [0, 0], sizes = [16, 16], strides = [1, 1]} : vector<16x32xf32> to vector<16x16xf32>
    %47 = vector.extract_strided_slice %30 {offsets = [0, 0], sizes = [16, 16], strides = [1, 1]} : vector<16x32xf32> to vector<16x16xf32>
    %48 = vector.extract_strided_slice %31 {offsets = [0, 0], sizes = [16, 16], strides = [1, 1]} : vector<16x32xf32> to vector<16x16xf32>
    %49 = vector.extract_strided_slice %34 {offsets = [0, 0], sizes = [31, 16], strides = [1, 1]} : vector<31x32xf32> to vector<31x16xf32>
    %cst_28 = arith.constant dense<0.000000e+00> : vector<16x16xf32>
    %50 = tpu.matmul %45, %47, %cst_28 {dimension_numbers = #tpu.dot_dimension_numbers<[1], [1], [0], [0], [0, 0, 1, 0], [], []>} : vector<16x16xf32>, vector<16x16xf32>, vector<16x16xf32> -> vector<16x16xf32>
    %cst_29 = arith.constant dense<0.000000e+00> : vector<16x31xf32>
    %51 = tpu.matmul %46, %49, %cst_29 {dimension_numbers = #tpu.dot_dimension_numbers<[1], [1], [0], [0], [0, 0, 1, 0], [], []>} : vector<16x16xf32>, vector<31x16xf32>, vector<16x31xf32> -> vector<16x31xf32>
    %52 = vector.extract_strided_slice %51 {offsets = [0, 15], sizes = [1, 16], strides = [1, 1]} : vector<16x31xf32> to vector<1x16xf32>
    %53 = vector.extract_strided_slice %51 {offsets = [1, 14], sizes = [1, 16], strides = [1, 1]} : vector<16x31xf32> to vector<1x16xf32>
    %54 = vector.extract_strided_slice %51 {offsets = [2, 13], sizes = [1, 16], strides = [1, 1]} : vector<16x31xf32> to vector<1x16xf32>
    %55 = vector.extract_strided_slice %51 {offsets = [3, 12], sizes = [1, 16], strides = [1, 1]} : vector<16x31xf32> to vector<1x16xf32>
    %56 = vector.extract_strided_slice %51 {offsets = [4, 11], sizes = [1, 16], strides = [1, 1]} : vector<16x31xf32> to vector<1x16xf32>
    %57 = vector.extract_strided_slice %51 {offsets = [5, 10], sizes = [1, 16], strides = [1, 1]} : vector<16x31xf32> to vector<1x16xf32>
    %58 = vector.extract_strided_slice %51 {offsets = [6, 9], sizes = [1, 16], strides = [1, 1]} : vector<16x31xf32> to vector<1x16xf32>
    %59 = vector.extract_strided_slice %51 {offsets = [7, 8], sizes = [1, 16], strides = [1, 1]} : vector<16x31xf32> to vector<1x16xf32>
    %60 = vector.extract_strided_slice %51 {offsets = [8, 7], sizes = [1, 16], strides = [1, 1]} : vector<16x31xf32> to vector<1x16xf32>
    %61 = vector.extract_strided_slice %51 {offsets = [9, 6], sizes = [1, 16], strides = [1, 1]} : vector<16x31xf32> to vector<1x16xf32>
    %62 = vector.extract_strided_slice %51 {offsets = [10, 5], sizes = [1, 16], strides = [1, 1]} : vector<16x31xf32> to vector<1x16xf32>
    %63 = vector.extract_strided_slice %51 {offsets = [11, 4], sizes = [1, 16], strides = [1, 1]} : vector<16x31xf32> to vector<1x16xf32>
    %64 = vector.extract_strided_slice %51 {offsets = [12, 3], sizes = [1, 16], strides = [1, 1]} : vector<16x31xf32> to vector<1x16xf32>
    %65 = vector.extract_strided_slice %51 {offsets = [13, 2], sizes = [1, 16], strides = [1, 1]} : vector<16x31xf32> to vector<1x16xf32>
    %66 = vector.extract_strided_slice %51 {offsets = [14, 1], sizes = [1, 16], strides = [1, 1]} : vector<16x31xf32> to vector<1x16xf32>
    %67 = vector.extract_strided_slice %51 {offsets = [15, 0], sizes = [1, 16], strides = [1, 1]} : vector<16x31xf32> to vector<1x16xf32>
    %68 = tpu.concatenate %52, %53, %54, %55, %56, %57, %58, %59, %60, %61, %62, %63, %64, %65, %66, %67 in 0 : vector<1x16xf32>, vector<1x16xf32>, vector<1x16xf32>, vector<1x16xf32>, vector<1x16xf32>, vector<1x16xf32>, vector<1x16xf32>, vector<1x16xf32>, vector<1x16xf32>, vector<1x16xf32>, vector<1x16xf32>, vector<1x16xf32>, vector<1x16xf32>, vector<1x16xf32>, vector<1x16xf32>, vector<1x16xf32> -> vector<16x16xf32>
    %69 = arith.addf %50, %68 : vector<16x16xf32>
    %cst_30 = arith.constant 2.500000e-01 : f32
    %70 = vector.broadcast %cst_30 : f32 to vector<16x16xf32>
    %71 = arith.mulf %69, %70 : vector<16x16xf32>
    %cst_31 = arith.constant -3.40282347E+38 : f32
    %72 = vector.shape_cast %44 : vector<1x16xi1> to vector<1x16xi1>
    %73 = vector.broadcast %72 : vector<1x16xi1> to vector<16x16xi1>
    %74 = vector.broadcast %cst_31 : f32 to vector<16x16xf32>
    %75 = arith.select %73, %71, %74 : vector<16x16xi1>, vector<16x16xf32>
    %cst_32 = arith.constant dense<0xFF800000> : vector<16xf32>
    %76 = vector.multi_reduction <maximumf>, %75, %cst_32 [1] : vector<16x16xf32> to vector<16xf32>
    %77 = vector.shape_cast %76 : vector<16xf32> to vector<16x1xf32>
    %78 = vector.broadcast %77 : vector<16x1xf32> to vector<16x16xf32>
    %79 = arith.subf %75, %78 : vector<16x16xf32>
    %80 = math.exp %79 : vector<16x16xf32>
    %cst_33 = arith.constant dense<0.000000e+00> : vector<16xf32>
    %81 = vector.multi_reduction <add>, %80, %cst_33 [1] : vector<16x16xf32> to vector<16xf32>
    %82 = vector.shape_cast %81 : vector<16xf32> to vector<16x1xf32>
    %83 = vector.broadcast %82 : vector<16x1xf32> to vector<16x16xf32>
    %84 = arith.divf %80, %83 : vector<16x16xf32>
    %cst_34 = arith.constant 0.000000e+00 : f32
    %85 = vector.shape_cast %44 : vector<1x16xi1> to vector<1x16xi1>
    %86 = vector.broadcast %85 : vector<1x16xi1> to vector<16x16xi1>
    %87 = vector.broadcast %cst_34 : f32 to vector<16x16xf32>
    %88 = arith.select %86, %84, %87 : vector<16x16xi1>, vector<16x16xf32>
    %cst_35 = arith.constant dense<0.000000e+00> : vector<16x16xf32>
    %89 = tpu.matmul %88, %48, %cst_35 {dimension_numbers = #tpu.dot_dimension_numbers<[1], [0], [0], [1], [0, 0, 1, 1], [], []>} : vector<16x16xf32>, vector<16x16xf32>, vector<16x16xf32> -> vector<16x16xf32>
    %90 = vector.extract_strided_slice %37 {offsets = [0, 16], sizes = [16, 16], strides = [1, 1]} : vector<16x32xf32> to vector<16x16xf32>
    %91 = vector.extract_strided_slice %40 {offsets = [0, 16], sizes = [16, 16], strides = [1, 1]} : vector<16x32xf32> to vector<16x16xf32>
    %92 = vector.extract_strided_slice %30 {offsets = [0, 16], sizes = [16, 16], strides = [1, 1]} : vector<16x32xf32> to vector<16x16xf32>
    %93 = vector.extract_strided_slice %31 {offsets = [0, 16], sizes = [16, 16], strides = [1, 1]} : vector<16x32xf32> to vector<16x16xf32>
    %94 = vector.extract_strided_slice %34 {offsets = [0, 16], sizes = [31, 16], strides = [1, 1]} : vector<31x32xf32> to vector<31x16xf32>
    %cst_36 = arith.constant dense<0.000000e+00> : vector<16x16xf32>
    %95 = tpu.matmul %90, %92, %cst_36 {dimension_numbers = #tpu.dot_dimension_numbers<[1], [1], [0], [0], [0, 0, 1, 0], [], []>} : vector<16x16xf32>, vector<16x16xf32>, vector<16x16xf32> -> vector<16x16xf32>
    %cst_37 = arith.constant dense<0.000000e+00> : vector<16x31xf32>
    %96 = tpu.matmul %91, %94, %cst_37 {dimension_numbers = #tpu.dot_dimension_numbers<[1], [1], [0], [0], [0, 0, 1, 0], [], []>} : vector<16x16xf32>, vector<31x16xf32>, vector<16x31xf32> -> vector<16x31xf32>
    %97 = vector.extract_strided_slice %96 {offsets = [0, 15], sizes = [1, 16], strides = [1, 1]} : vector<16x31xf32> to vector<1x16xf32>
    %98 = vector.extract_strided_slice %96 {offsets = [1, 14], sizes = [1, 16], strides = [1, 1]} : vector<16x31xf32> to vector<1x16xf32>
    %99 = vector.extract_strided_slice %96 {offsets = [2, 13], sizes = [1, 16], strides = [1, 1]} : vector<16x31xf32> to vector<1x16xf32>
    %100 = vector.extract_strided_slice %96 {offsets = [3, 12], sizes = [1, 16], strides = [1, 1]} : vector<16x31xf32> to vector<1x16xf32>
    %101 = vector.extract_strided_slice %96 {offsets = [4, 11], sizes = [1, 16], strides = [1, 1]} : vector<16x31xf32> to vector<1x16xf32>
    %102 = vector.extract_strided_slice %96 {offsets = [5, 10], sizes = [1, 16], strides = [1, 1]} : vector<16x31xf32> to vector<1x16xf32>
    %103 = vector.extract_strided_slice %96 {offsets = [6, 9], sizes = [1, 16], strides = [1, 1]} : vector<16x31xf32> to vector<1x16xf32>
    %104 = vector.extract_strided_slice %96 {offsets = [7, 8], sizes = [1, 16], strides = [1, 1]} : vector<16x31xf32> to vector<1x16xf32>
    %105 = vector.extract_strided_slice %96 {offsets = [8, 7], sizes = [1, 16], strides = [1, 1]} : vector<16x31xf32> to vector<1x16xf32>
    %106 = vector.extract_strided_slice %96 {offsets = [9, 6], sizes = [1, 16], strides = [1, 1]} : vector<16x31xf32> to vector<1x16xf32>
    %107 = vector.extract_strided_slice %96 {offsets = [10, 5], sizes = [1, 16], strides = [1, 1]} : vector<16x31xf32> to vector<1x16xf32>
    %108 = vector.extract_strided_slice %96 {offsets = [11, 4], sizes = [1, 16], strides = [1, 1]} : vector<16x31xf32> to vector<1x16xf32>
    %109 = vector.extract_strided_slice %96 {offsets = [12, 3], sizes = [1, 16], strides = [1, 1]} : vector<16x31xf32> to vector<1x16xf32>
    %110 = vector.extract_strided_slice %96 {offsets = [13, 2], sizes = [1, 16], strides = [1, 1]} : vector<16x31xf32> to vector<1x16xf32>
    %111 = vector.extract_strided_slice %96 {offsets = [14, 1], sizes = [1, 16], strides = [1, 1]} : vector<16x31xf32> to vector<1x16xf32>
    %112 = vector.extract_strided_slice %96 {offsets = [15, 0], sizes = [1, 16], strides = [1, 1]} : vector<16x31xf32> to vector<1x16xf32>
    %113 = tpu.concatenate %97, %98, %99, %100, %101, %102, %103, %104, %105, %106, %107, %108, %109, %110, %111, %112 in 0 : vector<1x16xf32>, vector<1x16xf32>, vector<1x16xf32>, vector<1x16xf32>, vector<1x16xf32>, vector<1x16xf32>, vector<1x16xf32>, vector<1x16xf32>, vector<1x16xf32>, vector<1x16xf32>, vector<1x16xf32>, vector<1x16xf32>, vector<1x16xf32>, vector<1x16xf32>, vector<1x16xf32>, vector<1x16xf32> -> vector<16x16xf32>
    %114 = arith.addf %95, %113 : vector<16x16xf32>
    %cst_38 = arith.constant 2.500000e-01 : f32
    %115 = vector.broadcast %cst_38 : f32 to vector<16x16xf32>
    %116 = arith.mulf %114, %115 : vector<16x16xf32>
    %cst_39 = arith.constant -3.40282347E+38 : f32
    %117 = vector.shape_cast %44 : vector<1x16xi1> to vector<1x16xi1>
    %118 = vector.broadcast %117 : vector<1x16xi1> to vector<16x16xi1>
    %119 = vector.broadcast %cst_39 : f32 to vector<16x16xf32>
    %120 = arith.select %118, %116, %119 : vector<16x16xi1>, vector<16x16xf32>
    %cst_40 = arith.constant dense<0xFF800000> : vector<16xf32>
    %121 = vector.multi_reduction <maximumf>, %120, %cst_40 [1] : vector<16x16xf32> to vector<16xf32>
    %122 = vector.shape_cast %121 : vector<16xf32> to vector<16x1xf32>
    %123 = vector.broadcast %122 : vector<16x1xf32> to vector<16x16xf32>
    %124 = arith.subf %120, %123 : vector<16x16xf32>
    %125 = math.exp %124 : vector<16x16xf32>
    %cst_41 = arith.constant dense<0.000000e+00> : vector<16xf32>
    %126 = vector.multi_reduction <add>, %125, %cst_41 [1] : vector<16x16xf32> to vector<16xf32>
    %127 = vector.shape_cast %126 : vector<16xf32> to vector<16x1xf32>
    %128 = vector.broadcast %127 : vector<16x1xf32> to vector<16x16xf32>
    %129 = arith.divf %125, %128 : vector<16x16xf32>
    %cst_42 = arith.constant 0.000000e+00 : f32
    %130 = vector.shape_cast %44 : vector<1x16xi1> to vector<1x16xi1>
    %131 = vector.broadcast %130 : vector<1x16xi1> to vector<16x16xi1>
    %132 = vector.broadcast %cst_42 : f32 to vector<16x16xf32>
    %133 = arith.select %131, %129, %132 : vector<16x16xi1>, vector<16x16xf32>
    %cst_43 = arith.constant dense<0.000000e+00> : vector<16x16xf32>
    %134 = tpu.matmul %133, %93, %cst_43 {dimension_numbers = #tpu.dot_dimension_numbers<[1], [0], [0], [1], [0, 0, 1, 1], [], []>} : vector<16x16xf32>, vector<16x16xf32>, vector<16x16xf32> -> vector<16x16xf32>
    %135 = tpu.concatenate %89, %134 in 1 : vector<16x16xf32>, vector<16x16xf32> -> vector<16x32xf32>
    %c0_44 = arith.constant 0 : index
    %c0_45 = arith.constant 0 : index
    %136 = vector.load %arg11[%c0_44, %c0_45] : memref<32x32xf32, #tpu.memory_space<vmem>>, vector<32x32xf32>
    %cst_46 = arith.constant dense<0.000000e+00> : vector<16x32xf32>
    %137 = tpu.matmul %135, %136, %cst_46 {dimension_numbers = #tpu.dot_dimension_numbers<[1], [0], [0], [1], [0, 0, 1, 1], [], []>} : vector<16x32xf32>, vector<32x32xf32>, vector<16x32xf32> -> vector<16x32xf32>
    %c0_47 = arith.constant 0 : index
    %c0_48 = arith.constant 0 : index
    %138 = vector.load %arg12[%c0_47, %c0_48] : memref<1x32xf32, #tpu.memory_space<vmem>>, vector<1x32xf32>
    %139 = vector.broadcast %138 : vector<1x32xf32> to vector<16x32xf32>
    %140 = arith.addf %137, %139 : vector<16x32xf32>
    %141 = arith.addf %1, %140 : vector<16x32xf32>
    %c0_49 = arith.constant 0 : index
    %c0_50 = arith.constant 0 : index
    %c0_51 = arith.constant 0 : index
    %142 = vector.load %arg13[%c0_49, %c0_50, %c0_51] : memref<1x16x32xf32, #tpu.memory_space<vmem>>, vector<1x16x32xf32>
    %143 = vector.shape_cast %142 : vector<1x16x32xf32> to vector<16x32xf32>
    %144 = vector.shape_cast %141 : vector<16x32xf32> to vector<1x16x32xf32>
    tpu.vector_store %arg13[%c0_49, %c0_50, %c0_51], %144 {strides = array<i32>} : memref<1x16x32xf32, #tpu.memory_space<vmem>>, vector<1x16x32xf32>,
    return
  }
  func.func @transform_0(%arg0: i32) -> (i32, i32, i32) {
    %c0_i32 = arith.constant 0 : i32
    %c0_i32_0 = arith.constant 0 : i32
    %c0_i32_1 = arith.constant 0 : i32
    return %arg0, %c0_i32, %c0_i32_0 : i32, i32, i32
  }
  func.func @transform_1(%arg0: i32) -> (i32, i32, i32) {
    %c0_i32 = arith.constant 0 : i32
    %c0_i32_0 = arith.constant 0 : i32
    %c0_i32_1 = arith.constant 0 : i32
    return %arg0, %c0_i32, %c0_i32_0 : i32, i32, i32
  }
  func.func @transform_2(%arg0: i32) -> (i32, i32) {
    %c0_i32 = arith.constant 0 : i32
    %c0_i32_0 = arith.constant 0 : i32
    %c0_i32_1 = arith.constant 0 : i32
    return %c0_i32, %c0_i32_0 : i32, i32
  }
  func.func @transform_3(%arg0: i32) -> (i32, i32) {
    %c0_i32 = arith.constant 0 : i32
    %c0_i32_0 = arith.constant 0 : i32
    %c0_i32_1 = arith.constant 0 : i32
    return %c0_i32, %c0_i32_0 : i32, i32
  }
  func.func @transform_4(%arg0: i32) -> (i32, i32) {
    %c0_i32 = arith.constant 0 : i32
    %c0_i32_0 = arith.constant 0 : i32
    %c0_i32_1 = arith.constant 0 : i32
    return %c0_i32, %c0_i32_0 : i32, i32
  }
  func.func @transform_5(%arg0: i32) -> (i32, i32) {
    %c0_i32 = arith.constant 0 : i32
    %c0_i32_0 = arith.constant 0 : i32
    %c0_i32_1 = arith.constant 0 : i32
    return %c0_i32, %c0_i32_0 : i32, i32
  }
  func.func @transform_6(%arg0: i32) -> (i32, i32) {
    %c0_i32 = arith.constant 0 : i32
    %c0_i32_0 = arith.constant 0 : i32
    %c0_i32_1 = arith.constant 0 : i32
    return %c0_i32, %c0_i32_0 : i32, i32
  }
  func.func @transform_7(%arg0: i32) -> (i32, i32) {
    %c0_i32 = arith.constant 0 : i32
    %c0_i32_0 = arith.constant 0 : i32
    %c0_i32_1 = arith.constant 0 : i32
    return %c0_i32, %c0_i32_0 : i32, i32
  }
  func.func @transform_8(%arg0: i32) -> (i32, i32) {
    %c0_i32 = arith.constant 0 : i32
    %c0_i32_0 = arith.constant 0 : i32
    %c0_i32_1 = arith.constant 0 : i32
    return %c0_i32, %c0_i32_0 : i32, i32
  }
  func.func @transform_9(%arg0: i32) -> (i32, i32) {
    %c0_i32 = arith.constant 0 : i32
    %c0_i32_0 = arith.constant 0 : i32
    %c0_i32_1 = arith.constant 0 : i32
    return %c0_i32, %c0_i32_0 : i32, i32
  }
  func.func @transform_10(%arg0: i32) -> (i32, i32) {
    %c0_i32 = arith.constant 0 : i32
    %c0_i32_0 = arith.constant 0 : i32
    %c0_i32_1 = arith.constant 0 : i32
    return %c0_i32, %c0_i32_0 : i32, i32
  }
  func.func @transform_11(%arg0: i32) -> (i32, i32) {
    %c0_i32 = arith.constant 0 : i32
    %c0_i32_0 = arith.constant 0 : i32
    %c0_i32_1 = arith.constant 0 : i32
    return %c0_i32, %c0_i32_0 : i32, i32
  }
  func.func @transform_12(%arg0: i32) -> (i32, i32, i32) {
    %c0_i32 = arith.constant 0 : i32
    %c0_i32_0 = arith.constant 0 : i32
    %c0_i32_1 = arith.constant 0 : i32
    return %arg0, %c0_i32, %c0_i32_0 : i32, i32, i32
  }
}

module attributes {stable_mosaic.version = 11 : i64} {
  func.func @_out_block_kernel(%arg0: i32, %arg1: memref<1x16x32xf32, #tpu.memory_space<vmem>>, %arg2: memref<1x32xf32, #tpu.memory_space<vmem>>, %arg3: memref<1x32xf32, #tpu.memory_space<vmem>>, %arg4: memref<32x128xf32, #tpu.memory_space<vmem>>, %arg5: memref<1x128xf32, #tpu.memory_space<vmem>>, %arg6: memref<1x16x128xf32, #tpu.memory_space<vmem>>) attributes {dimension_semantics = [#tpu.dimension_semantics<parallel>], iteration_bounds = array<i64: 2>, scalar_prefetch = 0 : i64, scratch_operands = 0 : i64, tpu.core_type = #tpu.core_type<tc>, window_params = [{transform_indices = @transform_0, window_bounds = array<i64: 1, 16, 32>}, {pipeline_mode = #tpu.pipeline_mode<synchronous>, transform_indices = @transform_1, window_bounds = array<i64: 1, 32>}, {pipeline_mode = #tpu.pipeline_mode<synchronous>, transform_indices = @transform_2, window_bounds = array<i64: 1, 32>}, {pipeline_mode = #tpu.pipeline_mode<synchronous>, transform_indices = @transform_3, window_bounds = array<i64: 32, 128>}, {pipeline_mode = #tpu.pipeline_mode<synchronous>, transform_indices = @transform_4, window_bounds = array<i64: 1, 128>}, {transform_indices = @transform_5, window_bounds = array<i64: 1, 16, 128>}]} {
    %c0 = arith.constant 0 : index
    %c0_0 = arith.constant 0 : index
    %c0_1 = arith.constant 0 : index
    %0 = vector.load %arg1[%c0, %c0_0, %c0_1] : memref<1x16x32xf32, #tpu.memory_space<vmem>>, vector<1x16x32xf32>
    %1 = vector.shape_cast %0 : vector<1x16x32xf32> to vector<16x32xf32>
    %c0_2 = arith.constant 0 : index
    %c0_3 = arith.constant 0 : index
    %2 = vector.load %arg2[%c0_2, %c0_3] : memref<1x32xf32, #tpu.memory_space<vmem>>, vector<1x32xf32>
    %c0_4 = arith.constant 0 : index
    %c0_5 = arith.constant 0 : index
    %3 = vector.load %arg3[%c0_4, %c0_5] : memref<1x32xf32, #tpu.memory_space<vmem>>, vector<1x32xf32>
    %cst = arith.constant dense<0.000000e+00> : vector<16xf32>
    %4 = vector.multi_reduction <add>, %1, %cst [1] : vector<16x32xf32> to vector<16xf32>
    %5 = vector.shape_cast %4 : vector<16xf32> to vector<16x1xf32>
    %cst_6 = arith.constant 3.200000e+01 : f32
    %6 = vector.broadcast %cst_6 : f32 to vector<16x1xf32>
    %7 = arith.divf %5, %6 : vector<16x1xf32>
    %8 = vector.broadcast %7 : vector<16x1xf32> to vector<16x32xf32>
    %9 = arith.subf %1, %8 : vector<16x32xf32>
    %10 = arith.mulf %9, %9 : vector<16x32xf32>
    %cst_7 = arith.constant dense<0.000000e+00> : vector<16xf32>
    %11 = vector.multi_reduction <add>, %10, %cst_7 [1] : vector<16x32xf32> to vector<16xf32>
    %12 = vector.shape_cast %11 : vector<16xf32> to vector<16x1xf32>
    %cst_8 = arith.constant 3.200000e+01 : f32
    %13 = vector.broadcast %cst_8 : f32 to vector<16x1xf32>
    %14 = arith.divf %12, %13 : vector<16x1xf32>
    %cst_9 = arith.constant 9.99999996E-13 : f32
    %15 = vector.broadcast %cst_9 : f32 to vector<16x1xf32>
    %16 = arith.addf %14, %15 : vector<16x1xf32>
    %17 = math.rsqrt %16 : vector<16x1xf32>
    %18 = vector.broadcast %17 : vector<16x1xf32> to vector<16x32xf32>
    %19 = arith.mulf %9, %18 : vector<16x32xf32>
    %20 = vector.broadcast %2 : vector<1x32xf32> to vector<16x32xf32>
    %21 = arith.mulf %19, %20 : vector<16x32xf32>
    %22 = vector.broadcast %3 : vector<1x32xf32> to vector<16x32xf32>
    %23 = arith.addf %21, %22 : vector<16x32xf32>
    %c0_10 = arith.constant 0 : index
    %c0_11 = arith.constant 0 : index
    %24 = vector.load %arg4[%c0_10, %c0_11] : memref<32x128xf32, #tpu.memory_space<vmem>>, vector<32x128xf32>
    %cst_12 = arith.constant dense<0.000000e+00> : vector<16x128xf32>
    %25 = tpu.matmul %23, %24, %cst_12 {dimension_numbers = #tpu.dot_dimension_numbers<[1], [0], [0], [1], [0, 0, 1, 1], [], []>} : vector<16x32xf32>, vector<32x128xf32>, vector<16x128xf32> -> vector<16x128xf32>
    %c0_13 = arith.constant 0 : index
    %c0_14 = arith.constant 0 : index
    %26 = vector.load %arg5[%c0_13, %c0_14] : memref<1x128xf32, #tpu.memory_space<vmem>>, vector<1x128xf32>
    %27 = vector.broadcast %26 : vector<1x128xf32> to vector<16x128xf32>
    %28 = arith.addf %25, %27 : vector<16x128xf32>
    %cst_15 = arith.constant dense<0xFF800000> : vector<16xf32>
    %29 = vector.multi_reduction <maximumf>, %28, %cst_15 [1] : vector<16x128xf32> to vector<16xf32>
    %30 = vector.shape_cast %29 : vector<16xf32> to vector<16x1xf32>
    %31 = vector.broadcast %30 : vector<16x1xf32> to vector<16x128xf32>
    %32 = arith.subf %28, %31 : vector<16x128xf32>
    %33 = math.exp %32 : vector<16x128xf32>
    %cst_16 = arith.constant dense<0.000000e+00> : vector<16xf32>
    %34 = vector.multi_reduction <add>, %33, %cst_16 [1] : vector<16x128xf32> to vector<16xf32>
    %35 = vector.shape_cast %34 : vector<16xf32> to vector<16x1xf32>
    %36 = math.log %35 : vector<16x1xf32>
    %37 = vector.broadcast %36 : vector<16x1xf32> to vector<16x128xf32>
    %38 = arith.subf %32, %37 : vector<16x128xf32>
    %c0_17 = arith.constant 0 : index
    %c0_18 = arith.constant 0 : index
    %c0_19 = arith.constant 0 : index
    %39 = vector.load %arg6[%c0_17, %c0_18, %c0_19] : memref<1x16x128xf32, #tpu.memory_space<vmem>>, vector<1x16x128xf32>
    %40 = vector.shape_cast %39 : vector<1x16x128xf32> to vector<16x128xf32>
    %41 = vector.shape_cast %38 : vector<16x128xf32> to vector<1x16x128xf32>
    tpu.vector_store %arg6[%c0_17, %c0_18, %c0_19], %41 {strides = array<i32>} : memref<1x16x128xf32, #tpu.memory_space<vmem>>, vector<1x16x128xf32>,
    return
  }
  func.func @transform_0(%arg0: i32) -> (i32, i32, i32) {
    %c0_i32 = arith.constant 0 : i32
    %c0_i32_0 = arith.constant 0 : i32
    %c0_i32_1 = arith.constant 0 : i32
    return %arg0, %c0_i32, %c0_i32_0 : i32, i32, i32
  }
  func.func @transform_1(%arg0: i32) -> (i32, i32) {
    %c0_i32 = arith.constant 0 : i32
    %c0_i32_0 = arith.constant 0 : i32
    %c0_i32_1 = arith.constant 0 : i32
    return %c0_i32, %c0_i32_0 : i32, i32
  }
  func.func @transform_2(%arg0: i32) -> (i32, i32) {
    %c0_i32 = arith.constant 0 : i32
    %c0_i32_0 = arith.constant 0 : i32
    %c0_i32_1 = arith.constant 0 : i32
    return %c0_i32, %c0_i32_0 : i32, i32
  }
  func.func @transform_3(%arg0: i32) -> (i32, i32) {
    %c0_i32 = arith.constant 0 : i32
    %c0_i32_0 = arith.constant 0 : i32
    %c0_i32_1 = arith.constant 0 : i32
    return %c0_i32, %c0_i32_0 : i32, i32
  }
  func.func @transform_4(%arg0: i32) -> (i32, i32) {
    %c0_i32 = arith.constant 0 : i32
    %c0_i32_0 = arith.constant 0 : i32
    %c0_i32_1 = arith.constant 0 : i32
    return %c0_i32, %c0_i32_0 : i32, i32
  }
  func.func @transform_5(%arg0: i32) -> (i32, i32, i32) {
    %c0_i32 = arith.constant 0 : i32
    %c0_i32_0 = arith.constant 0 : i32
    %c0_i32_1 = arith.constant 0 : i32
    return %arg0, %c0_i32, %c0_i32_0 : i32, i32, i32
  }
}

module attributes {stable_mosaic.version = 11 : i64} {
  func.func @_ff_block_kernel(%arg0: i32, %arg1: memref<1x16x32xf32, #tpu.memory_space<vmem>>, %arg2: memref<1x32xf32, #tpu.memory_space<vmem>>, %arg3: memref<1x32xf32, #tpu.memory_space<vmem>>, %arg4: memref<96x64xf32, #tpu.memory_space<vmem>>, %arg5: memref<1x64xf32, #tpu.memory_space<vmem>>, %arg6: memref<192x32xf32, #tpu.memory_space<vmem>>, %arg7: memref<1x32xf32, #tpu.memory_space<vmem>>, %arg8: memref<1x16x32xf32, #tpu.memory_space<vmem>>) attributes {dimension_semantics = [#tpu.dimension_semantics<parallel>], iteration_bounds = array<i64: 2>, scalar_prefetch = 0 : i64, scratch_operands = 0 : i64, tpu.core_type = #tpu.core_type<tc>, window_params = [{transform_indices = @transform_0, window_bounds = array<i64: 1, 16, 32>}, {pipeline_mode = #tpu.pipeline_mode<synchronous>, transform_indices = @transform_1, window_bounds = array<i64: 1, 32>}, {pipeline_mode = #tpu.pipeline_mode<synchronous>, transform_indices = @transform_2, window_bounds = array<i64: 1, 32>}, {pipeline_mode = #tpu.pipeline_mode<synchronous>, transform_indices = @transform_3, window_bounds = array<i64: 96, 64>}, {pipeline_mode = #tpu.pipeline_mode<synchronous>, transform_indices = @transform_4, window_bounds = array<i64: 1, 64>}, {pipeline_mode = #tpu.pipeline_mode<synchronous>, transform_indices = @transform_5, window_bounds = array<i64: 192, 32>}, {pipeline_mode = #tpu.pipeline_mode<synchronous>, transform_indices = @transform_6, window_bounds = array<i64: 1, 32>}, {transform_indices = @transform_7, window_bounds = array<i64: 1, 16, 32>}]} {
    %c0 = arith.constant 0 : index
    %c0_0 = arith.constant 0 : index
    %c0_1 = arith.constant 0 : index
    %0 = vector.load %arg1[%c0, %c0_0, %c0_1] : memref<1x16x32xf32, #tpu.memory_space<vmem>>, vector<1x16x32xf32>
    %1 = vector.shape_cast %0 : vector<1x16x32xf32> to vector<16x32xf32>
    %c0_2 = arith.constant 0 : index
    %c0_3 = arith.constant 0 : index
    %2 = vector.load %arg2[%c0_2, %c0_3] : memref<1x32xf32, #tpu.memory_space<vmem>>, vector<1x32xf32>
    %c0_4 = arith.constant 0 : index
    %c0_5 = arith.constant 0 : index
    %3 = vector.load %arg3[%c0_4, %c0_5] : memref<1x32xf32, #tpu.memory_space<vmem>>, vector<1x32xf32>
    %cst = arith.constant dense<0.000000e+00> : vector<16xf32>
    %4 = vector.multi_reduction <add>, %1, %cst [1] : vector<16x32xf32> to vector<16xf32>
    %5 = vector.shape_cast %4 : vector<16xf32> to vector<16x1xf32>
    %cst_6 = arith.constant 3.200000e+01 : f32
    %6 = vector.broadcast %cst_6 : f32 to vector<16x1xf32>
    %7 = arith.divf %5, %6 : vector<16x1xf32>
    %8 = vector.broadcast %7 : vector<16x1xf32> to vector<16x32xf32>
    %9 = arith.subf %1, %8 : vector<16x32xf32>
    %10 = arith.mulf %9, %9 : vector<16x32xf32>
    %cst_7 = arith.constant dense<0.000000e+00> : vector<16xf32>
    %11 = vector.multi_reduction <add>, %10, %cst_7 [1] : vector<16x32xf32> to vector<16xf32>
    %12 = vector.shape_cast %11 : vector<16xf32> to vector<16x1xf32>
    %cst_8 = arith.constant 3.200000e+01 : f32
    %13 = vector.broadcast %cst_8 : f32 to vector<16x1xf32>
    %14 = arith.divf %12, %13 : vector<16x1xf32>
    %cst_9 = arith.constant 9.99999996E-13 : f32
    %15 = vector.broadcast %cst_9 : f32 to vector<16x1xf32>
    %16 = arith.addf %14, %15 : vector<16x1xf32>
    %17 = math.rsqrt %16 : vector<16x1xf32>
    %18 = vector.broadcast %17 : vector<16x1xf32> to vector<16x32xf32>
    %19 = arith.mulf %9, %18 : vector<16x32xf32>
    %20 = vector.broadcast %2 : vector<1x32xf32> to vector<16x32xf32>
    %21 = arith.mulf %19, %20 : vector<16x32xf32>
    %22 = vector.broadcast %3 : vector<1x32xf32> to vector<16x32xf32>
    %23 = arith.addf %21, %22 : vector<16x32xf32>
    %cst_10 = arith.constant 0.000000e+00 : f32
    %24 = vector.broadcast %cst_10 : f32 to vector<1x32xf32>
    %25 = vector.extract_strided_slice %23 {offsets = [0, 0], sizes = [15, 32], strides = [1, 1]} : vector<16x32xf32> to vector<15x32xf32>
    %26 = tpu.concatenate %24, %25 in 0 : vector<1x32xf32>, vector<15x32xf32> -> vector<16x32xf32>
    %27 = vector.extract_strided_slice %23 {offsets = [1, 0], sizes = [15, 32], strides = [1, 1]} : vector<16x32xf32> to vector<15x32xf32>
    %28 = tpu.concatenate %27, %24 in 0 : vector<15x32xf32>, vector<1x32xf32> -> vector<16x32xf32>
    %29 = tpu.concatenate %26, %23, %28 in 1 : vector<16x32xf32>, vector<16x32xf32>, vector<16x32xf32> -> vector<16x96xf32>
    %c0_11 = arith.constant 0 : index
    %c0_12 = arith.constant 0 : index
    %30 = vector.load %arg4[%c0_11, %c0_12] : memref<96x64xf32, #tpu.memory_space<vmem>>, vector<96x64xf32>
    %cst_13 = arith.constant dense<0.000000e+00> : vector<16x64xf32>
    %31 = tpu.matmul %29, %30, %cst_13 {dimension_numbers = #tpu.dot_dimension_numbers<[1], [0], [0], [1], [0, 0, 1, 1], [], []>} : vector<16x96xf32>, vector<96x64xf32>, vector<16x64xf32> -> vector<16x64xf32>
    %c0_14 = arith.constant 0 : index
    %c0_15 = arith.constant 0 : index
    %32 = vector.load %arg5[%c0_14, %c0_15] : memref<1x64xf32, #tpu.memory_space<vmem>>, vector<1x64xf32>
    %33 = vector.broadcast %32 : vector<1x64xf32> to vector<16x64xf32>
    %34 = arith.addf %31, %33 : vector<16x64xf32>
    %cst_16 = arith.constant 0.000000e+00 : f32
    %35 = vector.broadcast %cst_16 : f32 to vector<16x64xf32>
    %36 = arith.maximumf %34, %35 : vector<16x64xf32>
    %cst_17 = arith.constant 0.000000e+00 : f32
    %37 = vector.broadcast %cst_17 : f32 to vector<1x64xf32>
    %38 = vector.extract_strided_slice %36 {offsets = [0, 0], sizes = [15, 64], strides = [1, 1]} : vector<16x64xf32> to vector<15x64xf32>
    %39 = tpu.concatenate %37, %38 in 0 : vector<1x64xf32>, vector<15x64xf32> -> vector<16x64xf32>
    %40 = vector.extract_strided_slice %36 {offsets = [1, 0], sizes = [15, 64], strides = [1, 1]} : vector<16x64xf32> to vector<15x64xf32>
    %41 = tpu.concatenate %40, %37 in 0 : vector<15x64xf32>, vector<1x64xf32> -> vector<16x64xf32>
    %42 = tpu.concatenate %39, %36, %41 in 1 : vector<16x64xf32>, vector<16x64xf32>, vector<16x64xf32> -> vector<16x192xf32>
    %c0_18 = arith.constant 0 : index
    %c0_19 = arith.constant 0 : index
    %43 = vector.load %arg6[%c0_18, %c0_19] : memref<192x32xf32, #tpu.memory_space<vmem>>, vector<192x32xf32>
    %cst_20 = arith.constant dense<0.000000e+00> : vector<16x32xf32>
    %44 = tpu.matmul %42, %43, %cst_20 {dimension_numbers = #tpu.dot_dimension_numbers<[1], [0], [0], [1], [0, 0, 1, 1], [], []>} : vector<16x192xf32>, vector<192x32xf32>, vector<16x32xf32> -> vector<16x32xf32>
    %c0_21 = arith.constant 0 : index
    %c0_22 = arith.constant 0 : index
    %45 = vector.load %arg7[%c0_21, %c0_22] : memref<1x32xf32, #tpu.memory_space<vmem>>, vector<1x32xf32>
    %46 = vector.broadcast %45 : vector<1x32xf32> to vector<16x32xf32>
    %47 = arith.addf %44, %46 : vector<16x32xf32>
    %48 = arith.addf %1, %47 : vector<16x32xf32>
    %c0_23 = arith.constant 0 : index
    %c0_24 = arith.constant 0 : index
    %c0_25 = arith.constant 0 : index
    %49 = vector.load %arg8[%c0_23, %c0_24, %c0_25] : memref<1x16x32xf32, #tpu.memory_space<vmem>>, vector<1x16x32xf32>
    %50 = vector.shape_cast %49 : vector<1x16x32xf32> to vector<16x32xf32>
    %51 = vector.shape_cast %48 : vector<16x32xf32> to vector<1x16x32xf32>
    tpu.vector_store %arg8[%c0_23, %c0_24, %c0_25], %51 {strides = array<i32>} : memref<1x16x32xf32, #tpu.memory_space<vmem>>, vector<1x16x32xf32>,
    return
  }
  func.func @transform_0(%arg0: i32) -> (i32, i32, i32) {
    %c0_i32 = arith.constant 0 : i32
    %c0_i32_0 = arith.constant 0 : i32
    %c0_i32_1 = arith.constant 0 : i32
    return %arg0, %c0_i32, %c0_i32_0 : i32, i32, i32
  }
  func.func @transform_1(%arg0: i32) -> (i32, i32) {
    %c0_i32 = arith.constant 0 : i32
    %c0_i32_0 = arith.constant 0 : i32
    %c0_i32_1 = arith.constant 0 : i32
    return %c0_i32, %c0_i32_0 : i32, i32
  }
  func.func @transform_2(%arg0: i32) -> (i32, i32) {
    %c0_i32 = arith.constant 0 : i32
    %c0_i32_0 = arith.constant 0 : i32
    %c0_i32_1 = arith.constant 0 : i32
    return %c0_i32, %c0_i32_0 : i32, i32
  }
  func.func @transform_3(%arg0: i32) -> (i32, i32) {
    %c0_i32 = arith.constant 0 : i32
    %c0_i32_0 = arith.constant 0 : i32
    %c0_i32_1 = arith.constant 0 : i32
    return %c0_i32, %c0_i32_0 : i32, i32
  }
  func.func @transform_4(%arg0: i32) -> (i32, i32) {
    %c0_i32 = arith.constant 0 : i32
    %c0_i32_0 = arith.constant 0 : i32
    %c0_i32_1 = arith.constant 0 : i32
    return %c0_i32, %c0_i32_0 : i32, i32
  }
  func.func @transform_5(%arg0: i32) -> (i32, i32) {
    %c0_i32 = arith.constant 0 : i32
    %c0_i32_0 = arith.constant 0 : i32
    %c0_i32_1 = arith.constant 0 : i32
    return %c0_i32, %c0_i32_0 : i32, i32
  }
  func.func @transform_6(%arg0: i32) -> (i32, i32) {
    %c0_i32 = arith.constant 0 : i32
    %c0_i32_0 = arith.constant 0 : i32
    %c0_i32_1 = arith.constant 0 : i32
    return %c0_i32, %c0_i32_0 : i32, i32
  }
  func.func @transform_7(%arg0: i32) -> (i32, i32, i32) {
    %c0_i32 = arith.constant 0 : i32
    %c0_i32_0 = arith.constant 0 : i32
    %c0_i32_1 = arith.constant 0 : i32
    return %arg0, %c0_i32, %c0_i32_0 : i32, i32, i32
  }
}

</mosaic_0001>

<bundles_post_ra>
// kernel: phoneme_predictor_forward.5
= control target key start
LH: loop header
LB: loop body
LE: loop exit
PB: predicated region body
PF: predicated region fallthrough
CT: control target
= control target key end

     0   :  { %s2049_s21 = smov 0   ;;  %s2356_s0 = inlined_call_operand.vmem [shape: f32[2,16,32], index: 0, kind: input, shape index: {}]   ;;  %s2357_s1 = inlined_call_operand.vmem [shape: f32[2,1,16], index: 1, kind: input, shape index: {}]   ;;  %s2358_s2 = inlined_call_operand.vmem [shape: f32[1,32], index: 2, kind: input, shape index: {}]   ;;  %s2359_s3 = inlined_call_operand.vmem [shape: f32[1,32], index: 3, kind: input, shape index: {}]   ;;  %s2360_s4 = inlined_call_operand.vmem [shape: f32[32,96], index: 4, kind: input, shape index: {}]   ;;  %s2361_s5 = inlined_call_operand.vmem [shape: f32[1,96], index: 5, kind: input, shape index: {}]   ;;  %s2362_s6 = inlined_call_operand.vmem [shape: f32[31,32], index: 6, kind: input, shape index: {}]   ;;  %s2363_s7 = inlined_call_operand.vmem [shape: f32[32,32], index: 7, kind: input, shape index: {}]   ;;  %s2364_s8 = inlined_call_operand.vmem [shape: f32[1,32], index: 8, kind: input, shape index: {}]   ;;  %s2365_s9 = inlined_call_operand.vmem [shape: f32[1,32], index: 9, kind: input, shape index: {}]   ;;  %s2366_s10 = inlined_call_operand.vmem [shape: f32[32,32], index: 10, kind: input, shape index: {}]   ;;  %s2367_s11 = inlined_call_operand.vmem [shape: f32[1,32], index: 11, kind: input, shape index: {}]   ;;  %s2368_s12 = inlined_call_operand.vmem [shape: f32[2,16,32], index: 12, kind: output, shape index: {}]  }
   0x1 LB: > { %s1619_s22 = sadd.s32 4294967295, %s1959_s21   ;;  %p1623_p0 = scmp.ge.s32.totalorder %s1959_s21, 1  ;;  %s1959_s21 = sphi %s2049_s21, %s22_s21  }
   0x2   : > { %p370_p1 = scmp.lt.s32.totalorder %s1959_s21, 3 }
   0x4   : > { %p371_p2 = pnand %p1623_p0, %p370_p1 }
   0x5   : > { %p415_p3 = scmp.lt.s32.totalorder (!%p371_p2), %s1619_s22, 1  ;;  %vm432_vm0 = vcmask (!%p371_p2), 261120   ;;  %v572_v14 = vld [vmem:[%s2363_s7] sm:$0xff] (!%p371_p2)  ;;  %v573_v15 = vld [vmem:[%s2363_s7 + $0x8] sm:$0xff] (!%p371_p2)  ;;  %v574_v17 = vld [vmem:[%s2363_s7 + $0x10] sm:$0xff] (!%p371_p2)  ;;  %vm693_vm1 = vcmask (!%p371_p2), 130048  }
   0x6   : > { %374 = sbr.rel (%p371_p2) target bundleno = 2709 (0xa95), region = 68  ;;  %v1812_v16 = vpack.c.bf16 (!%p371_p2), %v573_v15, %v572_v14  ;;  %v575_v18 = vld [vmem:[%s2363_s7 + $0x18] sm:$0xff] (!%p371_p2)  ;;  %v568_v20 = vld [vmem:[%s2362_s6] sm:$0xff] (!%p371_p2)  ;;  %v569_v21 = vld [vmem:[%s2362_s6 + $0x8] sm:$0xff] (!%p371_p2)  ;;  %s1961_s13 = smov (!%p371_p2), 96   ;;  %vm834_vm3 = vcmask (!%p371_p2), 1040384  }
   0x7   : > { %v1816_v19 = vpack.c.bf16 (!%p371_p2), %v575_v18, %v574_v17  ;;  %v476_v22 = vld [vmem:[%s2360_s4] sm:$0xff] (!%p371_p2)  ;;  %1737 = vmatprep.mubr.msk.f32.mxu1 (!%p371_p2), %vm432_vm0, %v568_v20  ;;  %v477_v23 = vld [vmem:[%s2360_s4 + $0x8] sm:$0xff] (!%p371_p2)  ;;  %v570_v24 = vld [vmem:[%s2362_s6 + $0x10] sm:$0xff] (!%p371_p2)  ;;  %s1962_s14 = smov (!%p371_p2), 9   ;;  %s1963_s15 = smov (!%p371_p2), 8   ;;  %vm836_vm4 = vcmask (!%p371_p2), 1041408  }
   0x8   : > { %1813 = vmatprep.subr.bf16.mxu1 (!%p371_p2), %v1812_v16  ;;  %v1804_v25 = vpack.c.bf16 (!%p371_p2), %v477_v23, %v476_v22  ;;  %v478_v26 = vld [vmem:[%s2360_s4 + $0x10] sm:$0xff] (!%p371_p2)  ;;  %v479_v27 = vld [vmem:[%s2360_s4 + $0x18] sm:$0xff] (!%p371_p2)  ;;  %v1628_v37 = vld [vmem:[%s2358_s2] ss:$0 sm:$0xff] (!%p371_p2)  ;;  %s1964_s16 = smov (!%p371_p2), 10   ;;  %s1965_s17 = smov (!%p371_p2), 1  }
   0x9   : > { %1815 = vmatpush3.bf16.msra.mxu1 (!%p371_p2), %v1812_v16  ;;  %v571_v28 = vld [vmem:[%s2362_s6 + $0x18] sm:$0x7f] (!%p371_p2)  ;;  %v1808_v29 = vpack.c.bf16 (!%p371_p2), %v479_v27, %v478_v26  ;;  %v1629_v39 = vld [vmem:[%s2359_s3] ss:$0 sm:$0xff] (!%p371_p2)  ;;  %vm2131_vm2 = vmpackc.low (!%p371_p2), %vm693_vm1, %vm693_vm1  ;;  %s1966_s18 = smov (!%p371_p2), 11   ;;  %s1967_s19 = smov (!%p371_p2), 2  }
   0xa   : > { %1817 = vmatprep.subr.bf16.mxu1 (!%p371_p2), %v1816_v19  ;;  %1805 = vmatprep.subr.bf16.mxu0 (!%p371_p2), %v1804_v25  ;;  %v1630_v55 = vld [vmem:[%s2361_s5] ss:$0 sm:$0xff] (!%p371_p2)  ;;  %s1968_s20 = smov (!%p371_p2), 12   ;;  %s1969_s24 = smov (!%p371_p2), 3   ;;  %vm838_vm5 = vcmask (!%p371_p2), 1042432   ;;  %vm840_vm6 = vcmask (!%p371_p2), 1043456  }
   0xb   : > { %1807 = vmatpush3.bf16.msra.mxu0 (!%p371_p2), %v1804_v25  ;;  %v1637_v57 = vld [vmem:[%s2364_s8] ss:$0 sm:$0xff] (!%p371_p2)  ;;  %s1970_s25 = smov (!%p371_p2), 13   ;;  %s2372_s27 = smov (!%p371_p2), 14   ;;  %vm842_vm7 = vcmask (!%p371_p2), 1044480   ;;  %vm846_vm8 = vcmask (!%p371_p2), 1046528  }
   0xc   : > { %1809 = vmatprep.subr.bf16.mxu0 (!%p371_p2), %v1808_v29  ;;  %v1638_v60 = vld [vmem:[%s2365_s9] ss:$0 sm:$0xff] (!%p371_p2)  ;;  %s1973_s28 = smov (!%p371_p2), 5   ;;  %s1974_s29 = smov (!%p371_p2), 6   ;;  %vm844_vm9 = vcmask (!%p371_p2), 1045504  }
   0xd   : > { %s2380_s22 = smov (!%p415_p3, %s1619_s22), 1  ;;  %1819 = vmatpush3.bf16.msra.mxu1 %v1816_v19  ;;  %s2371_s30 = smov 7  }
   0xe   : > { %s2369_s23 = sshll.u32 %s2380_s22, 4 }
   0xf   : > { %s419_s26 = scalar_lea.vmem %s2356_s0, %s2369_s23  ;;  %1811 = vmatpush3.bf16.msra.mxu0 %v1808_v29  ;;  %s1977_s23 = smov 113  }
  0x10   : > { %v2065_v0 = vld [vmem:[%s419_s26] sm:$0xff]  ;;  %v2067_v1 = vld [vmem:[%s419_s26 + $0x8] sm:$0xff]  ;;  %1738 = vmatmul.mubr.msk.f32.vlgmr.msra.gmra.mrb[0].mxu1 %vm432_vm0, %v569_v21  ;;  %s1971_s26 = smov 4  }
  0x11   : > { %v433_v2 = vsel %vm432_vm0, %v2065_v0, 0.0  ;;  %v436_v3 = vsel %vm432_vm0, %v2067_v1, 0.0  ;;  %1740 = vmatprep.mubr.msk.f32.mxu1 %vm432_vm0, %v570_v24 }
  0x12   : > { %434 = vadd.xlane.f32.xlu0 %v433_v2 }
  0x14   : > { %1741 = vmatmul.mubr.msk.f32.gmra.mrb[2].mxu1 %vm432_vm0, %v571_v28 }
  0x16   : > { %437 = vadd.xlane.f32.xlu0 %v436_v3 }
  0x9f   : > { %v435_v4 = vpop.xlane.xlu0 %434 }
  0xa0   : > { %v440_v5 = vmul.f32 0.03125, %v435_v4 }
  0xa2   : > { %v442_v6 = vsub.f32 %v2065_v0, %v440_v5 }
  0xa3   : > { %v438_v7 = vpop.xlane.xlu0 %437 }
  0xa4   : > { %v441_v8 = vmul.f32 0.03125, %v438_v7  ;;  %v444_v9 = vmul.f32 %v442_v6, %v442_v6 }
  0xa6   : > { %v443_v10 = vsub.f32 %v2067_v1, %v441_v8  ;;  %v446_v11 = vsel %vm432_vm0, %v444_v9, 0.0 }
  0xa7   : > { %447 = vadd.xlane.f32.xlu1 %v446_v11 }
  0xa8   : > { %v445_v12 = vmul.f32 %v443_v10, %v443_v10 }
  0xaa   : > { %v449_v13 = vsel %vm432_vm0, %v445_v12, 0.0 }
  0xab   : > { %450 = vadd.xlane.f32.xlu1 %v449_v13 }
  0xe3   : > { %v2125_v46 = vpop.f32.mrb[0].mxu1 }
  0xe4   : > { %v2127_v47 = vpop.f32.mrb[1].mxu1 }
  0xe5   : > { %v1913_v49 = vpack.i.bf16 %v2125_v46, %v2127_v47  ;;  %v1820_v50 = vpack.c.bf16 %v2125_v46, %v2127_v47 }
  0xe7   : > { %1822 = vmatprep.subr.msk.bf16.mxu0 %vm2131_vm2, %v1820_v50  ;;  %v2141_v51 = vpop.f32.mrb[2].mxu1 }
  0xe8   : > { %v2145_v52 = vpop.f32.mrb[3].mxu1 }
  0xe9   : > { %v1918_v53 = vpack.i.bf16 %v2141_v51, %v2145_v52  ;;  %v1826_v54 = vpack.c.bf16 %v2141_v51, %v2145_v52 }
 0x134   : > { %v448_v30 = vpop.xlane.xlu1 %447 }
 0x135   : > { %v452_v31 = vmul.f32 0.03125, %v448_v30 }
 0x137   : > { %v454_v32 = vadd.f32 1e-12, %v452_v31 }
 0x138   : > { %v451_v33 = vpop.xlane.xlu1 %450 }
 0x139   : > { %1933 = vrsqrt.f32 %v454_v32  ;;  %v453_v34 = vmul.f32 0.03125, %v451_v33 }
 0x13b   : > { %v455_v35 = vadd.f32 1e-12, %v453_v34 }
 0x13d   : > { %1935 = vrsqrt.f32 %v455_v35 }
 0x143   : > { %v1934_v36 = vpop.eup %1933 }
 0x144   : > { %v458_v38 = vmul.f32 %v1934_v36, %v442_v6 }
 0x146   : > { %v466_v40 = vmul.f32 %v1628_v37, %v458_v38 }
 0x147   : > { %v1936_v41 = vpop.eup %1935 }
 0x148   : > { %v459_v42 = vmul.f32 %v1936_v41, %v443_v10  ;;  %v474_v43 = vadd.f32 %v1629_v39, %v466_v40 }
 0x14a   : > { %v467_v44 = vmul.f32 %v1628_v37, %v459_v42  ;;  %1726 = vmatprep.mubr.msk.f32.mxu0 %vm432_vm0, %v474_v43  ;;  %v957_v42 = vlaneseq }
 0x14c   : > { %v475_v45 = vadd.f32 %v1629_v39, %v467_v44  ;;  %v958_v44 = vshrl.u32 %v957_v42, 7 }
 0x14e   : > { %1727 = vmatmul.mubr.msk.f32.vlgmr.msra.gmra.mrb[0].mxu0 %vm432_vm0, %v475_v45  ;;  %v959_v45 = vsub.s32 0, %v958_v44 }
 0x14f   : > { %1825 = vmatpush3.bf16.xpose.msk.msra.mxu0 %vm2131_vm2, %v1820_v50  ;;  %v1978_v50 = vmov 0  }
 0x150   : > { %1828 = vmatprep.subr.msk.bf16.mxu0 %vm2131_vm2, %v1826_v54 }
 0x157   : > { %1831 = vmatpush3.bf16.xpose.msk.msra.mxu0 %vm2131_vm2, %v1826_v54 }
 0x221   : > { %v1728_v56 = vpop.f32.mrb[0].mxu0 }
 0x222   : > { %v565_v58 = vadd.f32 %v1728_v56, %v1630_v55  ;;  %v559_v59 = vpop.f32.mrb[1].mxu0 }
 0x223   : > { %v560_v61 = vadd.f32 %v1630_v55, %v559_v59 }
 0x224   : > { %v2164_v62 = vadd.f32 %v1637_v57, %v565_v58  ;;  %v2172_v4 = vadd.f32 %v1638_v60, %v565_v58 }
 0x225   : > { %v2166_v63 = vpack.i.bf16 %v565_v58, %v560_v61  ;;  %v2168_v2 = vadd.f32 %v1638_v60, %v560_v61  ;;  %v2170_v3 = vadd.f32 %v1637_v57, %v560_v61 }
 0x227   : > { %1904 = vrot.lane.b32.xlu0 %v2166_v63, %s1961_s13  ;;  %1751 = vmatprep.mubr.msk.f32.mxu0 %vm693_vm1, %v2168_v2  ;;  %s2370_s13 = smov 15  }
 0x228   : > { %1758 = vmatprep.mubr.msk.f32.mxu1 %vm693_vm1, %v2170_v3  ;;  %1752 = vmatmul.mubr.msk.f32.vlgmr.msra.gmra.mrb[2].mxu0 %vm693_vm1, %v2172_v4 }
 0x299   : > { %v1905_v5 = vpop.permute.xlu0 %1904 }
 0x29a   : > { %v1907_v6 = vunpack.i.h.bf16 %v1905_v5  ;;  %v1906_v7 = vunpack.i.l.bf16 %v1905_v5 }
 0x29c   : > { %v1832_v8 = vpack.c.bf16 %v1907_v6, %v1906_v7 }
 0x29e   : > { %1834 = vmatprep.subr.msk.bf16.mxu1 %vm2131_vm2, %v1832_v8 }
 0x29f   : > { %1837 = vmatpush3.bf16.xpose.msk.msra.mxu1 %vm2131_vm2, %v1832_v8 }
 0x2a6   : > { %1759 = vmatmul.mubr.msk.f32.vlgmr.msra.gmra.mrb[4].mxu1 %vm693_vm1, %v2164_v62 }
 0x2fb   : > { %v1753_v9 = vpop.f32.mrb[2].mxu0 }
 0x2fc   : > { %813 = vrot.lane.b32.xlu0 %v1753_v9, %s1962_s14  ;;  %810 = vrot.lane.b32.xlu1 %v1753_v9, %s1963_s15  ;;  %v778_v10 = vpop.f32.mrb[3].mxu0 }
 0x300   : > { %816 = vrot.lane.b32.xlu0 %v1753_v9, %s1964_s16  ;;  %788 = vrot.lane.b32.xlu1 %v778_v10, %s1965_s17 }
 0x304   : > { %819 = vrot.lane.b32.xlu0 %v1753_v9, %s1966_s18  ;;  %791 = vrot.lane.b32.xlu1 %v778_v10, %s1967_s19 }
 0x308   : > { %822 = vrot.lane.b32.xlu0 %v1753_v9, %s1968_s20  ;;  %794 = vrot.lane.b32.xlu1 %v778_v10, %s1969_s24 }
 0x30c   : > { %825 = vrot.lane.b32.xlu0 %v1753_v9, %s1970_s25  ;;  %797 = vrot.lane.b32.xlu1 %v778_v10, %s1971_s26 }
 0x310   : > { %828 = vrot.lane.b32.xlu0 %v1753_v9, %s2372_s27  ;;  %800 = vrot.lane.b32.xlu1 %v778_v10, %s1973_s28  ;;  %s422_s27 = scalar_lea.vmem %s2357_s1, %s2380_s22 }
 0x311   : > { %v691_v43 = vld [vmem:[%s422_s27] sm:$0x1]  ;;  %s1979_s27 = smov 112  }
 0x312   : > { %vm692_vm10 = vcmp.gt.f32.partialorder %v691_v43, 0.0 }
 0x313   : > { %v956_v54 = vsel %vm692_vm10, 1, %v1978_v50 }
 0x314   : > { %803 = vrot.lane.b32.xlu1 %v778_v10, %s1974_s29  ;;  %v2222_v55 = vrot.slane %v956_v54, %v959_v45 }
 0x316   : > { %vm961_vm11 = vcmp.eq.s32.totalorder %v2222_v55, 1  ;;  %v1462_v55 = vld [vmem:[%s2366_s10 + $0x18] sm:$0xff] }
 0x318   : > { %806 = vrot.lane.b32.xlu1 %v778_v10, %s2371_s30  ;;  %s1980_s30 = smov 80  }
 0x31c   : > { %831 = vrot.lane.b32.xlu1 %v1753_v9, %s2370_s13  ;;  %s1981_s13 = smov 64  }
 0x36e   : > { %v814_v11 = vpop.permute.xlu0 %813  ;;  %v811_v12 = vpop.permute.xlu1 %810 }
 0x36f   : > { %v848_v29 = vsel %vm834_vm3, %v811_v12, %v814_v11 }
 0x372   : > { %v789_v13 = vpop.permute.xlu1 %788  ;;  %v817_v14 = vpop.permute.xlu0 %816 }
 0x373   : > { %v835_v23 = vsel %vm834_vm3, %v778_v10, %v789_v13  ;;  %v849_v31 = vsel %vm836_vm4, %v848_v29, %v817_v14 }
 0x376   : > { %v792_v15 = vpop.permute.xlu1 %791  ;;  %v820_v16 = vpop.permute.xlu0 %819 }
 0x377   : > { %v837_v25 = vsel %vm836_vm4, %v835_v23, %v792_v15  ;;  %v850_v34 = vsel %vm838_vm5, %v849_v31, %v820_v16 }
 0x379   : > { %v1760_v17 = vpop.f32.mrb[4].mxu1 }
 0x37a   : > { %v795_v18 = vpop.permute.xlu1 %794  ;;  %v945_v19 = vpop.f32.mrb[5].mxu1 }
 0x37b   : > { %v823_v21 = vpop.permute.xlu0 %822  ;;  %v839_v27 = vsel %vm838_vm5, %v837_v25, %v795_v18 }
 0x37c   : > { %v851_v37 = vsel %vm840_vm6, %v850_v34, %v823_v21 }
 0x37e   : > { %v798_v20 = vpop.permute.xlu1 %797 }
 0x37f   : > { %v826_v24 = vpop.permute.xlu0 %825  ;;  %v841_v28 = vsel %vm840_vm6, %v839_v27, %v798_v20 }
 0x380   : > { %v852_v38 = vsel %vm842_vm7, %v851_v37, %v826_v24 }
 0x382   : > { %v801_v22 = vpop.permute.xlu1 %800 }
 0x383   : > { %v843_v30 = vsel %vm842_vm7, %v841_v28, %v801_v22  ;;  %v829_v35 = vpop.permute.xlu0 %828 }
 0x384   : > { %v853_v39 = vsel %vm844_vm9, %v852_v38, %v829_v35 }
 0x386   : > { %v804_v26 = vpop.permute.xlu1 %803 }
 0x387   : > { %v845_v32 = vsel %vm844_vm9, %v843_v30, %v804_v26 }
 0x38a   : > { %v807_v33 = vpop.permute.xlu1 %806 }
 0x38b   : > { %v847_v36 = vsel %vm846_vm8, %v845_v32, %v807_v33 }
 0x38c   : > { %863 = vrot.lane.b32.xlu0 %v847_v36, %s1977_s23 }
 0x38e   : > { %v832_v40 = vpop.permute.xlu1 %831 }
 0x38f   : > { %v854_v41 = vsel %vm846_vm8, %v853_v39, %v832_v40 }
 0x390   : > { %865 = vrot.lane.b32.xlu1 %v854_v41, %s1977_s23 }
 0x3fe   : > { %v864_v56 = vpop.permute.xlu0 %863 }
 0x3ff   : > { %v946_v57 = vadd.f32 %v945_v19, %v864_v56 }
 0x401   : > { %v954_v58 = vmul.f32 0.25, %v946_v57 }
 0x402   : > { %v866_v59 = vpop.permute.xlu1 %865 }
 0x403   : > { %v951_v60 = vadd.f32 %v1760_v17, %v866_v59  ;;  %v962_v61 = vsel %vm961_vm11, %v954_v58, -3.4028235e+38 }
 0x404   : > { %v964_v5 = vsel %vm693_vm1, %v962_v61, -inf }
 0x405   : > { %v955_v6 = vmul.f32 0.25, %v951_v60  ;;  %965 = vmax.xlane.f32.xlu0 %v964_v5 }
 0x407   : > { %v963_v7 = vsel %vm961_vm11, %v955_v6, -3.4028235e+38 }
 0x408   : > { %v967_v8 = vsel %vm693_vm1, %v963_v7, -inf }
 0x409   : > { %968 = vmax.xlane.f32.xlu1 %v967_v8 }
 0x41a   : > { %1914 = vrot.lane.b32.xlu1 %v1913_v49, %s1979_s27 }
 0x41e   : > { %1919 = vrot.lane.b32.xlu1 %v1918_v53, %s1979_s27 }
 0x422   : > { %1075 = vrot.lane.b32.xlu1 %v2168_v2, %s1979_s27 }
 0x426   : > { %1924 = vrot.lane.b32.xlu1 %v2166_v63, %s1980_s30 }
 0x42a   : > { %1237 = vrot.lane.b32.xlu1 %v2164_v62, %s1979_s27 }
 0x492   : > { %v966_v9 = vpop.xlane.xlu0 %965 }
 0x493   : > { %v970_v10 = vsub.f32 %v962_v61, %v966_v9 }
 0x495   : > { %v972_v46 = vmul.f32 1.442695, %v970_v10 }
 0x496   : > { %v969_v11 = vpop.xlane.xlu1 %968 }
 0x497   : > { %v971_v12 = vsub.f32 %v963_v7, %v969_v11 }
 0x499   : > { %v974_v47 = vmul.f32 1.442695, %v971_v12 }
 0x49a   : > { %v1915_v49 = vpop.permute.xlu1 %1914 }
 0x49b   : > { %1937 = vpow2.f32 %v974_v47  ;;  %v1917_v21 = vunpack.i.h.bf16 %v1915_v49  ;;  %v1916_v22 = vunpack.i.l.bf16 %v1915_v49 }
 0x49c   : > { %1939 = vpow2.f32 %v972_v46 }
 0x49d   : > { %v1842_v28 = vpack.c.bf16 %v1917_v21, %v1916_v22 }
 0x49e   : > { %v1920_v51 = vpop.permute.xlu1 %1919 }
 0x49f   : > { %v1922_v32 = vunpack.i.h.bf16 %v1920_v51  ;;  %v1921_v33 = vunpack.i.l.bf16 %v1920_v51 }
 0x4a1   : > { %v1848_v36 = vpack.c.bf16 %v1922_v32, %v1921_v33 }
 0x4a2   : > { %v1076_v52 = vpop.permute.xlu1 %1075 }
 0x4a5   : > { %v1938_v53 = vpop.eup %1937 }
 0x4a6   : > { %v1925_v13 = vpop.permute.xlu1 %1924  ;;  %v979_v2 = vsel %vm693_vm1, %v1938_v53, 0.0  ;;  %v1940_v14 = vpop.eup %1939 }
 0x4a7   : > { %v1927_v15 = vunpack.i.h.bf16 %v1925_v13  ;;  %v1926_v16 = vunpack.i.l.bf16 %v1925_v13  ;;  %980 = vadd.xlane.f32.xlu0 %v979_v2  ;;  %v976_v17 = vsel %vm693_vm1, %v1940_v14, 0.0 }
 0x4a9   : > { %v1854_v62 = vpack.c.bf16 %v1927_v15, %v1926_v16 }
 0x4aa   : > { %v1238_v31 = vpop.permute.xlu1 %1237 }
 0x4ab   : > { %1856 = vmatprep.subr.msk.bf16.mxu0 %vm2131_vm2, %v1854_v62  ;;  %977 = vadd.xlane.f32.xlu0 %v976_v17 }
 0x4ac   : > { %1859 = vmatpush3.bf16.xpose.msk.msra.mxu0 %vm2131_vm2, %v1854_v62 }
 0x4c1   : > { %1909 = vrot.lane.b32.xlu0 %v2166_v63, %s1981_s13  ;;  %s2378_s13 = sshll.u32 %s2380_s22, 4 }
 0x4c5   : > { %1077 = vrot.lane.b32.xlu0 %v2172_v4, %s1979_s27 }
 0x4c9   : > { %1235 = vrot.lane.b32.xlu0 %v2170_v3, %s1979_s27 }
 0x534   : > { %v981_v18 = vpop.xlane.xlu0 %980 }
 0x535   : > { %1941 = vrcp.f32 %v981_v18 }
 0x538   : > { %v978_v19 = vpop.xlane.xlu0 %977 }
 0x539   : > { %1943 = vrcp.f32 %v978_v19 }
 0x53c   : > { %v1910_v20 = vpop.permute.xlu0 %1909 }
 0x53d   : > { %v1912_v23 = vunpack.i.h.bf16 %v1910_v20  ;;  %v1911_v24 = vunpack.i.l.bf16 %v1910_v20 }
 0x53f   : > { %v1838_v25 = vpack.c.bf16 %v1912_v23, %v1911_v24  ;;  %v1942_v26 = vpop.eup %1941 }
 0x540   : > { %v1078_v27 = vpop.permute.xlu0 %1077  ;;  %v985_v3 = vmul.f32 %v1942_v26, %v1938_v53 }
 0x541   : > { %1839 = vmatprep.subr.bf16.mxu1 %v1838_v25 }
 0x542   : > { %1841 = vmatpush3.bf16.msra.mxu1 %v1838_v25  ;;  %v987_v35 = vsel %vm961_vm11, %v985_v3, 0.0 }
 0x543   : > { %v1944_v29 = vpop.eup %1943  ;;  %1844 = vmatprep.subr.msk.bf16.mxu1 %vm2131_vm2, %v1842_v28 }
 0x544   : > { %v1236_v4 = vpop.permute.xlu0 %1235  ;;  %v983_v30 = vmul.f32 %v1944_v29, %v1940_v14 }
 0x545   : > { %1783 = vmatprep.mubr.msk.f32.mxu0 %vm693_vm1, %v1236_v4 }
 0x546   : > { %1784 = vmatmul.mubr.msk.f32.vlgmr.msra.gmra.mrb[4].mxu0 %vm693_vm1, %v1238_v31  ;;  %v986_v34 = vsel %vm961_vm11, %v983_v30, 0.0 }
 0x547   : > { %1765 = vmatprep.mubr.msk.f32.mxu1 %vm693_vm1, %v986_v34 }
 0x548   : > { %1766 = vmatmul.mubr.msk.f32.vlgmr.msra.gmra.mrb[6].mxu1 %vm693_vm1, %v987_v35 }
 0x549   : > { %1776 = vmatprep.mubr.msk.f32.mxu1 %vm693_vm1, %v1076_v52 }
 0x54b   : > { %1847 = vmatpush3.bf16.xpose.msk.msra.mxu1 %vm2131_vm2, %v1842_v28 }
 0x54c   : > { %1850 = vmatprep.subr.msk.bf16.mxu1 %vm2131_vm2, %v1848_v36 }
 0x553   : > { %1853 = vmatpush3.bf16.xpose.msk.msra.mxu1 %vm2131_vm2, %v1848_v36 }
 0x55a   : > { %1777 = vmatmul.mubr.msk.f32.vlgmr.msra.gmra.mrb[8].mxu1 %vm693_vm1, %v1078_v27 }
 0x619   : > { %v1785_v37 = vpop.f32.mrb[4].mxu0 }
 0x61a   : > { %v1325_v38 = vpop.f32.mrb[5].mxu0 }
 0x61b   : > { %v2273_v39 = vpop.f32.mrb[6].mxu1 }
 0x61c   : > { %v2275_v40 = vpop.f32.mrb[7].mxu1 }
 0x62d   : > { %v1778_v41 = vpop.f32.mrb[8].mxu1 }
 0x62e   : > { %1200 = vrot.lane.b32.xlu1 %v1778_v41, %s1962_s14  ;;  %1197 = vrot.lane.b32.xlu0 %v1778_v41, %s1963_s15  ;;  %v1165_v42 = vpop.f32.mrb[9].mxu1  ;;  %s2375_s14 = smov 14   ;;  %s2376_s15 = smov 7  }
 0x632   : > { %1203 = vrot.lane.b32.xlu1 %v1778_v41, %s1964_s16  ;;  %1175 = vrot.lane.b32.xlu0 %v1165_v42, %s1965_s17  ;;  %s2377_s16 = smov 15   ;;  %s1982_s17 = smov 48  }
 0x636   : > { %1206 = vrot.lane.b32.xlu1 %v1778_v41, %s1966_s18  ;;  %1181 = vrot.lane.b32.xlu0 %v1165_v42, %s1969_s24 }
 0x63a   : > { %1209 = vrot.lane.b32.xlu1 %v1778_v41, %s1968_s20  ;;  %1184 = vrot.lane.b32.xlu0 %v1165_v42, %s1971_s26 }
 0x63e   : > { %1178 = vrot.lane.b32.xlu1 %v1165_v42, %s1967_s19  ;;  %1187 = vrot.lane.b32.xlu0 %v1165_v42, %s1973_s28 }
 0x642   : > { %1212 = vrot.lane.b32.xlu1 %v1778_v41, %s1970_s25  ;;  %1190 = vrot.lane.b32.xlu0 %v1165_v42, %s1974_s29  ;;  %s1983_s29 = smov 16  }
 0x646   : > { %1215 = vrot.lane.b32.xlu1 %v1778_v41, %s2375_s14  ;;  %1193 = vrot.lane.b32.xlu0 %v1165_v42, %s2376_s15 }
 0x64a   : > { %1218 = vrot.lane.b32.xlu0 %v1778_v41, %s2377_s16  ;;  %s427_s16 = scalar_lea.vmem %s2368_s12, %s2378_s13 }
 0x6a0   : > { %v1201_v48 = vpop.permute.xlu1 %1200  ;;  %v1198_v43 = vpop.permute.xlu0 %1197 }
 0x6a1   : > { %v1228_v10 = vsel %vm834_vm3, %v1198_v43, %v1201_v48 }
 0x6a4   : > { %v1204_v44 = vpop.permute.xlu1 %1203  ;;  %v1176_v45 = vpop.permute.xlu0 %1175 }
 0x6a5   : > { %v1221_v58 = vsel %vm834_vm3, %v1165_v42, %v1176_v45  ;;  %v1229_v11 = vsel %vm836_vm4, %v1228_v10, %v1204_v44  ;;  %v1459_v44 = vld [vmem:[%s2366_s10] sm:$0xff]  ;;  %v1460_v45 = vld [vmem:[%s2366_s10 + $0x8] sm:$0xff] }
 0x6a8   : > { %v1207_v50 = vpop.permute.xlu1 %1206  ;;  %v1182_v54 = vpop.permute.xlu0 %1181 }
 0x6a9   : > { %v1230_v47 = vsel %vm838_vm5, %v1229_v11, %v1207_v50  ;;  %v1461_v50 = vld [vmem:[%s2366_s10 + $0x10] sm:$0xff] }
 0x6ac   : > { %v1210_v56 = vpop.permute.xlu1 %1209  ;;  %v1185_v57 = vpop.permute.xlu0 %1184 }
 0x6ad   : > { %v1231_v52 = vsel %vm840_vm6, %v1230_v47, %v1210_v56  ;;  %v1868_v56 = vpack.c.bf16 %v1462_v55, %v1461_v50 }
 0x6b0   : > { %v1179_v59 = vpop.permute.xlu1 %1178  ;;  %v1188_v60 = vpop.permute.xlu0 %1187 }
 0x6b1   : > { %v1222_v61 = vsel %vm836_vm4, %v1221_v58, %v1179_v59 }
 0x6b2   : > { %v1223_v5 = vsel %vm838_vm5, %v1222_v61, %v1182_v54  ;;  %v1864_v54 = vpack.c.bf16 %v1460_v45, %v1459_v44 }
 0x6b3   : > { %v1224_v6 = vsel %vm840_vm6, %v1223_v5, %v1185_v57 }
 0x6b4   : > { %v1213_v7 = vpop.permute.xlu1 %1212  ;;  %v1191_v8 = vpop.permute.xlu0 %1190  ;;  %v1225_v9 = vsel %vm842_vm7, %v1224_v6, %v1188_v60  ;;  %1865 = vmatprep.subr.bf16.mxu0 %v1864_v54  ;;  %v1663_v6 = vld [vmem:[%s2367_s11] ss:$0 sm:$0xff] }
 0x6b5   : > { %v1226_v12 = vsel %vm844_vm9, %v1225_v9, %v1191_v8  ;;  %v1232_v53 = vsel %vm842_vm7, %v1231_v52, %v1213_v7  ;;  %1867 = vmatpush3.bf16.msra.mxu0 %v1864_v54 }
 0x6b6   : > { %1869 = vmatprep.subr.bf16.mxu0 %v1868_v56 }
 0x6b8   : > { %v1194_v46 = vpop.permute.xlu0 %1193  ;;  %v1216_v49 = vpop.permute.xlu1 %1215 }
 0x6b9   : > { %v1227_v51 = vsel %vm846_vm8, %v1226_v12, %v1194_v46  ;;  %v1233_v13 = vsel %vm844_vm9, %v1232_v53, %v1216_v49  ;;  %1871 = vmatpush3.bf16.msra.mxu0 %v1868_v56 }
 0x6ba   : > { %1245 = vrot.lane.b32.xlu1 %v1227_v51, %s1977_s23 }
 0x6bc   : > { %v1219_v2 = vpop.permute.xlu0 %1218 }
 0x6bd   : > { %v1234_v14 = vsel %vm846_vm8, %v1233_v13, %v1219_v2 }
 0x6be   : > { %1247 = vrot.lane.b32.xlu0 %v1234_v14, %s1977_s23 }
 0x72c   : > { %v1246_v15 = vpop.permute.xlu1 %1245 }
 0x72d   : > { %v1326_v16 = vadd.f32 %v1325_v38, %v1246_v15 }
 0x72f   : > { %v1334_v62 = vmul.f32 0.25, %v1326_v16 }
 0x730   : > { %v1248_v17 = vpop.permute.xlu0 %1247 }
 0x731   : > { %v1331_v18 = vadd.f32 %v1785_v37, %v1248_v17  ;;  %v1336_v19 = vsel %vm961_vm11, %v1334_v62, -3.4028235e+38 }
 0x732   : > { %v1338_v20 = vsel %vm693_vm1, %v1336_v19, -inf }
 0x733   : > { %v1335_v21 = vmul.f32 0.25, %v1331_v18  ;;  %1339 = vmax.xlane.f32.xlu1 %v1338_v20 }
 0x735   : > { %v1337_v22 = vsel %vm961_vm11, %v1335_v21, -3.4028235e+38 }
 0x736   : > { %v1341_v23 = vsel %vm693_vm1, %v1337_v22, -inf }
 0x737   : > { %1342 = vmax.xlane.f32.xlu0 %v1341_v23 }
 0x744   : > { %1929 = vrot.lane.b32.xlu1 %v2166_v63, %s1982_s17 }
 0x7c0   : > { %v1340_v24 = vpop.xlane.xlu1 %1339 }
 0x7c1   : > { %v1344_v25 = vsub.f32 %v1336_v19, %v1340_v24 }
 0x7c3   : > { %v1346_v26 = vmul.f32 1.442695, %v1344_v25 }
 0x7c4   : > { %v1930_v27 = vpop.permute.xlu1 %1929  ;;  %v1343_v28 = vpop.xlane.xlu0 %1342 }
 0x7c5   : > { %1945 = vpow2.f32 %v1346_v26  ;;  %v1932_v29 = vunpack.i.h.bf16 %v1930_v27  ;;  %v1931_v3 = vunpack.i.l.bf16 %v1930_v27  ;;  %v1345_v4 = vsub.f32 %v1337_v22, %v1343_v28 }
 0x7c7   : > { %v1860_v30 = vpack.c.bf16 %v1932_v29, %v1931_v3  ;;  %v1348_v31 = vmul.f32 1.442695, %v1345_v4 }
 0x7c9   : > { %1947 = vpow2.f32 %v1348_v31  ;;  %1861 = vmatprep.subr.bf16.mxu1 %v1860_v30 }
 0x7ca   : > { %1863 = vmatpush3.bf16.msra.mxu1 %v1860_v30 }
 0x7cf   : > { %v1946_v32 = vpop.eup %1945 }
 0x7d0   : > { %v1350_v33 = vsel %vm693_vm1, %v1946_v32, 0.0 }
 0x7d1   : > { %1351 = vadd.xlane.f32.xlu0 %v1350_v33 }
 0x7d3   : > { %v1948_v34 = vpop.eup %1947 }
 0x7d4   : > { %v1353_v63 = vsel %vm693_vm1, %v1948_v34, 0.0 }
 0x7d5   : > { %1354 = vadd.xlane.f32.xlu0 %v1353_v63 }
 0x85e   : > { %v1352_v35 = vpop.xlane.xlu0 %1351 }
 0x85f   : > { %1949 = vrcp.f32 %v1352_v35 }
 0x862   : > { %v1355_v36 = vpop.xlane.xlu0 %1354 }
 0x863   : > { %1951 = vrcp.f32 %v1355_v36 }
 0x869   : > { %v1950_v37 = vpop.eup %1949 }
 0x86a   : > { %v1357_v38 = vmul.f32 %v1950_v37, %v1946_v32 }
 0x86c   : > { %v1360_v41 = vsel %vm961_vm11, %v1357_v38, 0.0 }
 0x86d   : > { %v1952_v42 = vpop.eup %1951  ;;  %1790 = vmatprep.mubr.msk.f32.mxu1 %vm693_vm1, %v1360_v41 }
 0x86e   : > { %v1359_v48 = vmul.f32 %v1952_v42, %v1948_v34 }
 0x870   : > { %v1361_v43 = vsel %vm961_vm11, %v1359_v48, 0.0 }
 0x871   : > { %1791 = vmatmul.mubr.msk.f32.vlgmr.msra.gmra.mrb[10].mxu1 %vm693_vm1, %v1361_v43 }
 0x944   : > { %v1792_v57 = vpop.f32.mrb[10].mxu1 }
 0x945   : > { %1453 = vrot.lane.b32.xlu1 %v1792_v57, %s1983_s29  ;;  %v1440_v58 = vpop.f32.mrb[11].mxu1 }
 0x946   : > { %1451 = vrot.lane.b32.xlu0 %v1440_v58, %s1983_s29 }
 0x9b7   : > { %v1454_v59 = vpop.permute.xlu1 %1453 }
 0x9b8   : > { %v1452_v60 = vpop.permute.xlu0 %1451  ;;  %v1458_v5 = vsel %vm693_vm1, %v2273_v39, %v1454_v59 }
 0x9b9   : > { %v1457_v61 = vsel %vm693_vm1, %v2275_v40, %v1452_v60 }
 0x9ba   : > { %1801 = vmatprep.mubr.msk.f32.mxu0 %vm432_vm0, %v1457_v61 }
 0x9bb   : > { %1802 = vmatmul.mubr.msk.f32.vlgmr.msra.gmra.mrb[6].mxu0 %vm432_vm0, %v1458_v5 }
 0xa8e   : > { %v1803_v7 = vpop.f32.mrb[6].mxu0 }
 0xa8f   : > { %v1548_v8 = vadd.f32 %v1803_v7, %v1663_v6  ;;  %v1542_v9 = vpop.f32.mrb[7].mxu0 }
 0xa90   : > { %v1543_v40 = vadd.f32 %v1663_v6, %v1542_v9 }
 0xa91   : > { %v1552_v10 = vadd.f32 %v1548_v8, %v2067_v1 }
 0xa92   : > { %v1551_v39 = vadd.f32 %v1543_v40, %v2065_v0 }
 0xa93   : > { %1554 = vst.msk [vmem:[%s427_s16 + $0x8] sm:$0xff] %vm432_vm0, %v1552_v10 }
 0xa94   : > { %1553 = vst.msk [vmem:[%s427_s16] sm:$0xff] %vm432_vm0, %v1551_v39 }
 0xa95 PF: > { %s22_s21 = sadd.s32 1, %s1959_s21  }
 0xa96   : > { %p19_p4 = scmp.ge.s32.totalorder %s22_s21, 4  }
 0xa98   :  { %21 = sbr.rel (!%p19_p4) target bundleno = 1 (0x1), region = 101 }

// kernel: phoneme_predictor_forward.9
= control target key start
LH: loop header
LB: loop body
LE: loop exit
PB: predicated region body
PF: predicated region fallthrough
CT: control target
= control target key end

     0   :  { %s543_s18 = smov 0   ;;  %s594_s0 = inlined_call_operand.vmem [shape: f32[2,16,32], index: 0, kind: input, shape index: {}]   ;;  %s595_s1 = inlined_call_operand.vmem [shape: f32[1,32], index: 1, kind: input, shape index: {}]   ;;  %s596_s2 = inlined_call_operand.vmem [shape: f32[1,32], index: 2, kind: input, shape index: {}]   ;;  %s597_s3 = inlined_call_operand.vmem [shape: f32[32,128], index: 3, kind: input, shape index: {}]   ;;  %s598_s4 = inlined_call_operand.vmem [shape: f32[1,128], index: 4, kind: input, shape index: {}]   ;;  %s599_s5 = inlined_call_operand.vmem [shape: f32[2,16,128], index: 5, kind: output, shape index: {}]  }
   0x1 LB: > { %s442_s19 = sadd.s32 4294967295, %s511_s18   ;;  %p446_p0 = scmp.ge.s32.totalorder %s511_s18, 1  ;;  %s511_s18 = sphi %s543_s18, %s15_s18  }
   0x2   : > { %p187_p1 = scmp.lt.s32.totalorder %s511_s18, 3 }
   0x4   : > { %p188_p2 = pnand %p446_p0, %p187_p1 }
   0x5   : > { %p215_p3 = scmp.lt.s32.totalorder (!%p188_p2), %s442_s19, 1  ;;  %vm229_vm0 = vcmask (!%p188_p2), 261120   ;;  %v273_v14 = vld [vmem:[%s597_s3] sm:$0xff] (!%p188_p2)  ;;  %v274_v15 = vld [vmem:[%s597_s3 + $0x8] sm:$0xff] (!%p188_p2)  ;;  %v275_v16 = vld [vmem:[%s597_s3 + $0x10] sm:$0xff] (!%p188_p2) }
   0x6   : > { %191 = sbr.rel (%p188_p2) target bundleno = 864 (0x360), region = 40  ;;  %v477_v17 = vpack.c.bf16 (!%p188_p2), %v274_v15, %v273_v14  ;;  %v276_v18 = vld [vmem:[%s597_s3 + $0x18] sm:$0xff] (!%p188_p2)  ;;  %v451_v27 = vld [vmem:[%s595_s1] ss:$0 sm:$0xff] (!%p188_p2) }
   0x7   : > { %v481_v19 = vpack.c.bf16 (!%p188_p2), %v276_v18, %v275_v16  ;;  %v452_v29 = vld [vmem:[%s596_s2] ss:$0 sm:$0xff] (!%p188_p2) }
   0x8   : > { %478 = vmatprep.subr.bf16.mxu0 (!%p188_p2), %v477_v17  ;;  %v453_v36 = vld [vmem:[%s598_s4] ss:$0 sm:$0xff] (!%p188_p2) }
   0x9   : > { %480 = vmatpush3.bf16.msra.mxu0 (!%p188_p2), %v477_v17 }
   0xa   : > { %482 = vmatprep.subr.bf16.mxu0 (!%p188_p2), %v481_v19 }
   0xd   : > { %s601_s19 = smov (!%p215_p3, %s442_s19), 1  ;;  %484 = vmatpush3.bf16.msra.mxu0 %v481_v19 }
   0xe   : > { %s458_s20 = sshll.u32 %s601_s19, 4 }
   0xf   : > { %s219_s23 = scalar_lea.vmem %s594_s0, %s458_s20  ;;  %s224_s15 = scalar_lea.vmem %s599_s5, %s458_s20 }
  0x10   : > { %v225_v0 = vld [vmem:[%s219_s23] sm:$0xff]  ;;  %v226_v1 = vld [vmem:[%s219_s23 + $0x8] sm:$0xff] }
  0x11   : > { %v230_v2 = vsel %vm229_vm0, %v225_v0, 0.0  ;;  %v233_v3 = vsel %vm229_vm0, %v226_v1, 0.0 }
  0x12   : > { %231 = vadd.xlane.f32.xlu0 %v230_v2 }
  0x16   : > { %234 = vadd.xlane.f32.xlu0 %v233_v3 }
  0x9f   : > { %v232_v4 = vpop.xlane.xlu0 %231 }
  0xa0   : > { %v237_v5 = vmul.f32 0.03125, %v232_v4 }
  0xa2   : > { %v239_v6 = vsub.f32 %v225_v0, %v237_v5 }
  0xa3   : > { %v235_v7 = vpop.xlane.xlu0 %234 }
  0xa4   : > { %v238_v8 = vmul.f32 0.03125, %v235_v7  ;;  %v241_v9 = vmul.f32 %v239_v6, %v239_v6 }
  0xa6   : > { %v240_v10 = vsub.f32 %v226_v1, %v238_v8  ;;  %v243_v11 = vsel %vm229_vm0, %v241_v9, 0.0 }
  0xa7   : > { %244 = vadd.xlane.f32.xlu1 %v243_v11 }
  0xa8   : > { %v242_v12 = vmul.f32 %v240_v10, %v240_v10 }
  0xaa   : > { %v246_v13 = vsel %vm229_vm0, %v242_v12, 0.0 }
  0xab   : > { %247 = vadd.xlane.f32.xlu1 %v246_v13 }
 0x134   : > { %v245_v20 = vpop.xlane.xlu1 %244 }
 0x135   : > { %v249_v21 = vmul.f32 0.03125, %v245_v20 }
 0x137   : > { %v251_v22 = vadd.f32 1e-12, %v249_v21 }
 0x138   : > { %v248_v23 = vpop.xlane.xlu1 %247 }
 0x139   : > { %493 = vrsqrt.f32 %v251_v22  ;;  %v250_v24 = vmul.f32 0.03125, %v248_v23 }
 0x13b   : > { %v252_v25 = vadd.f32 1e-12, %v250_v24 }
 0x13d   : > { %495 = vrsqrt.f32 %v252_v25 }
 0x143   : > { %v494_v26 = vpop.eup %493 }
 0x144   : > { %v255_v28 = vmul.f32 %v494_v26, %v239_v6 }
 0x146   : > { %v263_v30 = vmul.f32 %v451_v27, %v255_v28 }
 0x147   : > { %v496_v31 = vpop.eup %495 }
 0x148   : > { %v256_v32 = vmul.f32 %v496_v31, %v240_v10  ;;  %v271_v33 = vadd.f32 %v452_v29, %v263_v30 }
 0x14a   : > { %v264_v34 = vmul.f32 %v451_v27, %v256_v32  ;;  %474 = vmatprep.mubr.msk.f32.mxu0 %vm229_vm0, %v271_v33 }
 0x14c   : > { %v272_v35 = vadd.f32 %v452_v29, %v264_v34 }
 0x14e   : > { %475 = vmatmul.mubr.msk.f32.vlgmr.msra.gmra.mrb[0].mxu0 %vm229_vm0, %v272_v35 }
 0x221   : > { %v476_v37 = vpop.f32.mrb[0].mxu0 }
 0x222   : > { %v362_v38 = vadd.f32 %v476_v37, %v453_v36  ;;  %v356_v39 = vpop.f32.mrb[1].mxu0 }
 0x223   : > { %v357_v40 = vadd.f32 %v453_v36, %v356_v39 }
 0x224   : > { %367 = vmax.xlane.f32.xlu1 %v362_v38 }
 0x225   : > { %365 = vmax.xlane.f32.xlu0 %v357_v40 }
 0x2b1   : > { %v368_v41 = vpop.xlane.xlu1 %367 }
 0x2b2   : > { %v370_v42 = vsub.f32 %v362_v38, %v368_v41  ;;  %v366_v43 = vpop.xlane.xlu0 %365 }
 0x2b3   : > { %v369_v44 = vsub.f32 %v357_v40, %v366_v43 }
 0x2b4   : > { %v373_v45 = vmul.f32 1.442695, %v370_v42 }
 0x2b5   : > { %v371_v46 = vmul.f32 1.442695, %v369_v44 }
 0x2b6   : > { %497 = vpow2.f32 %v373_v45 }
 0x2b7   : > { %499 = vpow2.f32 %v371_v46 }
 0x2c0   : > { %v498_v47 = vpop.eup %497 }
 0x2c1   : > { %v500_v48 = vpop.eup %499  ;;  %377 = vadd.xlane.f32.xlu1 %v498_v47 }
 0x2c2   : > { %375 = vadd.xlane.f32.xlu0 %v500_v48 }
 0x34e   : > { %v378_v49 = vpop.xlane.xlu1 %377 }
 0x34f   : > { %501 = vlog2.f32 %v378_v49  ;;  %v376_v50 = vpop.xlane.xlu0 %375 }
 0x350   : > { %503 = vlog2.f32 %v376_v50 }
 0x359   : > { %v502_v51 = vpop.eup %501 }
 0x35a   : > { %v504_v52 = vpop.eup %503  ;;  %v382_v53 = vmul.f32 0.6931472, %v502_v51 }
 0x35b   : > { %v380_v54 = vmul.f32 0.6931472, %v504_v52 }
 0x35c   : > { %v384_v55 = vsub.f32 %v370_v42, %v382_v53 }
 0x35d   : > { %v383_v56 = vsub.f32 %v369_v44, %v380_v54 }
 0x35e   : > { %386 = vst [vmem:[%s224_s15 + $0x8] sm:$0xff] %v384_v55 }
 0x35f   : > { %385 = vst [vmem:[%s224_s15] sm:$0xff] %v383_v56 }
 0x360 PF: > { %s15_s18 = sadd.s32 1, %s511_s18  }
 0x361   : > { %p12_p4 = scmp.ge.s32.totalorder %s15_s18, 4  }
 0x363   :  { %14 = sbr.rel (!%p12_p4) target bundleno = 1 (0x1), region = 70 }

// kernel: phoneme_predictor_forward.6
= control target key start
LH: loop header
LB: loop body
LE: loop exit
PB: predicated region body
PF: predicated region fallthrough
CT: control target
= control target key end

     0   :  { %s842_s24 = smov 0   ;;  %s1022_s0 = inlined_call_operand.vmem [shape: f32[2,16,32], index: 0, kind: input, shape index: {}]   ;;  %s1023_s1 = inlined_call_operand.vmem [shape: f32[1,32], index: 1, kind: input, shape index: {}]   ;;  %s1024_s2 = inlined_call_operand.vmem [shape: f32[1,32], index: 2, kind: input, shape index: {}]   ;;  %s1025_s3 = inlined_call_operand.vmem [shape: f32[96,64], index: 3, kind: input, shape index: {}]   ;;  %s1026_s4 = inlined_call_operand.vmem [shape: f32[1,64], index: 4, kind: input, shape index: {}]   ;;  %s1027_s5 = inlined_call_operand.vmem [shape: f32[192,32], index: 5, kind: input, shape index: {}]   ;;  %s1028_s6 = inlined_call_operand.vmem [shape: f32[1,32], index: 6, kind: input, shape index: {}]   ;;  %s1029_s7 = inlined_call_operand.vmem [shape: f32[2,16,32], index: 7, kind: output, shape index: {}]  }
   0x1 LB: > { %s654_s25 = sadd.s32 4294967295, %s797_s24   ;;  %p658_p0 = scmp.ge.s32.totalorder %s797_s24, 1  ;;  %s797_s24 = sphi %s842_s24, %s17_s24  }
   0x2   : > { %p237_p1 = scmp.lt.s32.totalorder %s797_s24, 3 }
   0x4   : > { %p238_p2 = pnand %p658_p0, %p237_p1 }
   0x5   : > { %p269_p3 = scmp.lt.s32.totalorder (!%p238_p2), %s654_s25, 1  ;;  %vm283_vm0 = vcmask (!%p238_p2), 261120   ;;  %v360_v14 = vld [vmem:[%s1025_s3] sm:$0xff] (!%p238_p2)  ;;  %v361_v15 = vld [vmem:[%s1025_s3 + $0x8] sm:$0xff] (!%p238_p2)  ;;  %v362_v16 = vld [vmem:[%s1025_s3 + $0x10] sm:$0xff] (!%p238_p2)  ;;  %s799_s15 = smov (!%p238_p2), 32  }
   0x6   : > { %241 = sbr.rel (%p238_p2) target bundleno = 1012 (0x3f4), region = 48  ;;  %v716_v17 = vpack.c.bf16 (!%p238_p2), %v361_v15, %v360_v14  ;;  %v363_v18 = vld [vmem:[%s1025_s3 + $0x18] sm:$0xff] (!%p238_p2)  ;;  %v364_v20 = vld [vmem:[%s1025_s3 + $0x20] sm:$0xff] (!%p238_p2)  ;;  %v365_v21 = vld [vmem:[%s1025_s3 + $0x28] sm:$0xff] (!%p238_p2)  ;;  %vm336_vm1 = vcmask (!%p238_p2), 1046528   ;;  %vm329_vm2 = vcmask (!%p238_p2), 1040384  }
   0x7   : > { %v720_v19 = vpack.c.bf16 (!%p238_p2), %v363_v18, %v362_v16  ;;  %v724_v22 = vpack.c.bf16 (!%p238_p2), %v365_v21, %v364_v20  ;;  %v366_v29 = vld [vmem:[%s1025_s3 + $0x30] sm:$0xff] (!%p238_p2)  ;;  %v367_v30 = vld [vmem:[%s1025_s3 + $0x38] sm:$0xff] (!%p238_p2)  ;;  %v368_v32 = vld [vmem:[%s1025_s3 + $0x40] sm:$0xff] (!%p238_p2)  ;;  %s800_s16 = smov (!%p238_p2), 64   ;;  %vm357_vm3 = vcmask (!%p238_p2), 523264   ;;  %vm379_vm4 = vcmask (!%p238_p2), 785408  }
   0x8   : > { %717 = vmatprep.subr.bf16.mxu0 (!%p238_p2), %v716_v17  ;;  %v728_v31 = vpack.c.bf16 (!%p238_p2), %v367_v30, %v366_v29  ;;  %v369_v33 = vld [vmem:[%s1025_s3 + $0x48] sm:$0xff] (!%p238_p2)  ;;  %v663_v36 = vld [vmem:[%s1023_s1] ss:$0 sm:$0xff] (!%p238_p2)  ;;  %v370_v37 = vld [vmem:[%s1025_s3 + $0x50] sm:$0xff] (!%p238_p2) }
   0x9   : > { %719 = vmatpush3.bf16.msra.mxu0 (!%p238_p2), %v716_v17  ;;  %v732_v34 = vpack.c.bf16 (!%p238_p2), %v369_v33, %v368_v32  ;;  %v371_v38 = vld [vmem:[%s1025_s3 + $0x58] sm:$0xff] (!%p238_p2)  ;;  %v664_v41 = vld [vmem:[%s1024_s2] ss:$0 sm:$0xff] (!%p238_p2)  ;;  %v493_v16 = vld [vmem:[%s1027_s5 + $0x48] sm:$0xff] (!%p238_p2) }
   0xa   : > { %721 = vmatprep.subr.bf16.mxu0 (!%p238_p2), %v720_v19  ;;  %v736_v40 = vpack.c.bf16 (!%p238_p2), %v371_v38, %v370_v37  ;;  %v492_v15 = vld [vmem:[%s1027_s5 + $0x40] sm:$0xff] (!%p238_p2)  ;;  %v494_v18 = vld [vmem:[%s1027_s5 + $0x50] sm:$0xff] (!%p238_p2)  ;;  %v507_v37 = vld [vmem:[%s1027_s5 + $0xb8] sm:$0xff] (!%p238_p2) }
   0xb   : > { %v753_v17 = vpack.c.bf16 (!%p238_p2), %v493_v16, %v492_v15  ;;  %v496_v21 = vld [vmem:[%s1027_s5 + $0x60] sm:$0xff] (!%p238_p2)  ;;  %v502_v30 = vld [vmem:[%s1027_s5 + $0x90] sm:$0xff] (!%p238_p2) }
   0xc   : > { %v504_v33 = vld [vmem:[%s1027_s5 + $0xa0] sm:$0xff] (!%p238_p2) }
   0xd   : > { %s1031_s25 = smov (!%p269_p3, %s654_s25), 1  ;;  %723 = vmatpush3.bf16.msra.mxu0 %v720_v19  ;;  %v495_v19 = vld [vmem:[%s1027_s5 + $0x58] sm:$0xff] }
   0xe   : > { %s673_s26 = sshll.u32 %s1031_s25, 4  ;;  %725 = vmatprep.subr.bf16.mxu0 %v724_v22  ;;  %v756_v20 = vpack.c.bf16 %v495_v19, %v494_v18 }
   0xf   : > { %s273_s29 = scalar_lea.vmem %s1022_s0, %s673_s26  ;;  %s278_s12 = scalar_lea.vmem %s1029_s7, %s673_s26 }
  0x10   : > { %v858_v0 = vld [vmem:[%s273_s29] sm:$0xff]  ;;  %v860_v1 = vld [vmem:[%s273_s29 + $0x8] sm:$0xff] }
  0x11   : > { %v284_v2 = vsel %vm283_vm0, %v858_v0, 0.0  ;;  %v287_v3 = vsel %vm283_vm0, %v860_v1, 0.0  ;;  %727 = vmatpush3.bf16.msra.mxu0 %v724_v22  ;;  %v497_v22 = vld [vmem:[%s1027_s5 + $0x68] sm:$0xff] }
  0x12   : > { %285 = vadd.xlane.f32.xlu0 %v284_v2  ;;  %729 = vmatprep.subr.bf16.mxu0 %v728_v31  ;;  %v484_v2 = vld [vmem:[%s1027_s5] sm:$0xff] }
  0x15   : > { %731 = vmatpush3.bf16.msra.mxu0 %v728_v31  ;;  %v503_v31 = vld [vmem:[%s1027_s5 + $0x98] sm:$0xff] }
  0x16   : > { %288 = vadd.xlane.f32.xlu0 %v287_v3  ;;  %733 = vmatprep.subr.bf16.mxu0 %v732_v34  ;;  %v485_v3 = vld [vmem:[%s1027_s5 + $0x8] sm:$0xff]  ;;  %v768_v32 = vpack.c.bf16 %v503_v31, %v502_v30 }
  0x19   : > { %735 = vmatpush3.bf16.msra.mxu0 %v732_v34  ;;  %v505_v34 = vld [vmem:[%s1027_s5 + $0xa8] sm:$0xff] }
  0x1a   : > { %737 = vmatprep.subr.bf16.mxu0 %v736_v40 }
  0x1d   : > { %739 = vmatpush3.bf16.msra.mxu0 %v736_v40 }
  0x9f   : > { %v286_v4 = vpop.xlane.xlu0 %285 }
  0xa0   : > { %v291_v5 = vmul.f32 0.03125, %v286_v4  ;;  %v486_v4 = vld [vmem:[%s1027_s5 + $0x10] sm:$0xff] }
  0xa2   : > { %v293_v6 = vsub.f32 %v858_v0, %v291_v5  ;;  %v801_v5 = vmov 0.0|0.0  }
  0xa3   : > { %v289_v7 = vpop.xlane.xlu0 %288  ;;  %740 = vmatprep.subr.bf16.mxu1 %v801_v5 }
  0xa4   : > { %v292_v8 = vmul.f32 0.03125, %v289_v7  ;;  %v295_v9 = vmul.f32 %v293_v6, %v293_v6  ;;  %v487_v7 = vld [vmem:[%s1027_s5 + $0x18] sm:$0xff] }
  0xa6   : > { %v294_v10 = vsub.f32 %v860_v1, %v292_v8  ;;  %v297_v11 = vsel %vm283_vm0, %v295_v9, 0.0  ;;  %v744_v8 = vpack.c.bf16 %v487_v7, %v486_v4  ;;  %v488_v9 = vld [vmem:[%s1027_s5 + $0x20] sm:$0xff] }
  0xa7   : > { %298 = vadd.xlane.f32.xlu1 %v297_v11 }
  0xa8   : > { %v296_v12 = vmul.f32 %v294_v10, %v294_v10 }
  0xaa   : > { %v300_v13 = vsel %vm283_vm0, %v296_v12, 0.0  ;;  %v490_v12 = vld [vmem:[%s1027_s5 + $0x30] sm:$0xff] }
  0xab   : > { %301 = vadd.xlane.f32.xlu1 %v300_v13  ;;  %v491_v13 = vld [vmem:[%s1027_s5 + $0x38] sm:$0xff] }
  0xac   : > { %v750_v14 = vpack.c.bf16 %v491_v13, %v490_v12 }
 0x134   : > { %v299_v23 = vpop.xlane.xlu1 %298 }
 0x135   : > { %v303_v24 = vmul.f32 0.03125, %v299_v23  ;;  %v759_v23 = vpack.c.bf16 %v497_v22, %v496_v21 }
 0x137   : > { %v305_v25 = vadd.f32 1e-12, %v303_v24  ;;  %v498_v24 = vld [vmem:[%s1027_s5 + $0x70] sm:$0xff] }
 0x138   : > { %v302_v26 = vpop.xlane.xlu1 %301 }
 0x139   : > { %787 = vrsqrt.f32 %v305_v25  ;;  %v304_v27 = vmul.f32 0.03125, %v302_v26  ;;  %v499_v25 = vld [vmem:[%s1027_s5 + $0x78] sm:$0xff] }
 0x13a   : > { %v762_v26 = vpack.c.bf16 %v499_v25, %v498_v24 }
 0x13b   : > { %v306_v28 = vadd.f32 1e-12, %v304_v27  ;;  %v500_v27 = vld [vmem:[%s1027_s5 + $0x80] sm:$0xff] }
 0x13d   : > { %789 = vrsqrt.f32 %v306_v28  ;;  %v501_v28 = vld [vmem:[%s1027_s5 + $0x88] sm:$0xff] }
 0x13e   : > { %v765_v29 = vpack.c.bf16 %v501_v28, %v500_v27 }
 0x143   : > { %v788_v35 = vpop.eup %787 }
 0x144   : > { %v309_v39 = vmul.f32 %v788_v35, %v293_v6  ;;  %v741_v6 = vpack.c.bf16 %v485_v3, %v484_v2  ;;  %v771_v35 = vpack.c.bf16 %v505_v34, %v504_v33 }
 0x146   : > { %v317_v42 = vmul.f32 %v663_v36, %v309_v39  ;;  %742 = vmatpush1.bf16.msra.mxu1 %v741_v6  ;;  %v665_v39 = vld [vmem:[%s1026_s4] ss:$0 sm:$0xff] }
 0x147   : > { %v790_v43 = vpop.eup %789  ;;  %743 = vmatprep.subr.bf16.mxu1 %v801_v5 }
 0x148   : > { %v325_v44 = vadd.f32 %v664_v41, %v317_v42  ;;  %v310_v45 = vmul.f32 %v790_v43, %v294_v10  ;;  %v489_v10 = vld [vmem:[%s1027_s5 + $0x28] sm:$0xff] }
 0x149   : > { %v747_v11 = vpack.c.bf16 %v489_v10, %v488_v9 }
 0x14a   : > { %342 = vrot.lane.b32.xlu0 %v325_v44, %s799_s15  ;;  %v318_v46 = vmul.f32 %v663_v36, %v310_v45  ;;  %v337_v48 = vrot.slane %v325_v44, 1  ;;  %v330_v50 = vrot.slane %v325_v44, 7  ;;  %745 = vmatpush1.bf16.msra.mxu1 %v744_v8  ;;  %v506_v36 = vld [vmem:[%s1027_s5 + $0xb0] sm:$0xff] }
 0x14b   : > { %746 = vmatprep.subr.bf16.mxu1 %v801_v5  ;;  %v774_v38 = vpack.c.bf16 %v507_v37, %v506_v36 }
 0x14c   : > { %v326_v47 = vadd.f32 %v664_v41, %v318_v46  ;;  %v335_v57 = vsel %vm329_vm2, 0.0, %v330_v50 }
 0x14e   : > { %344 = vrot.lane.b32.xlu1 %v326_v47, %s799_s15  ;;  %v338_v49 = vrot.slane %v326_v47, 1  ;;  %v331_v51 = vrot.slane %v326_v47, 7  ;;  %748 = vmatpush1.bf16.msra.mxu1 %v747_v11 }
 0x14f   : > { %749 = vmatprep.subr.bf16.mxu1 %v801_v5 }
 0x150   : > { %v339_v52 = vsel %vm336_vm1, %v337_v48, %v338_v49  ;;  %v332_v53 = vsel %vm329_vm2, %v330_v50, %v331_v51  ;;  %v341_v54 = vsel %vm336_vm1, %v338_v49, 0.0 }
 0x152   : > { %349 = vrot.lane.b32.xlu1 %v339_v52, %s800_s16  ;;  %751 = vmatpush1.bf16.msra.mxu1 %v750_v14 }
 0x153   : > { %752 = vmatprep.subr.bf16.mxu1 %v801_v5 }
 0x156   : > { %351 = vrot.lane.b32.xlu1 %v341_v54, %s800_s16  ;;  %754 = vmatpush1.bf16.msra.mxu1 %v753_v17 }
 0x157   : > { %755 = vmatprep.subr.bf16.mxu1 %v801_v5 }
 0x15a   : > { %757 = vmatpush1.bf16.msra.mxu1 %v756_v20 }
 0x15b   : > { %758 = vmatprep.subr.bf16.mxu1 %v801_v5 }
 0x15e   : > { %760 = vmatpush1.bf16.msra.mxu1 %v759_v23 }
 0x15f   : > { %761 = vmatprep.subr.bf16.mxu1 %v801_v5 }
 0x162   : > { %763 = vmatpush1.bf16.msra.mxu1 %v762_v26 }
 0x163   : > { %764 = vmatprep.subr.bf16.mxu1 %v801_v5 }
 0x166   : > { %766 = vmatpush1.bf16.msra.mxu1 %v765_v29 }
 0x167   : > { %767 = vmatprep.subr.bf16.mxu1 %v801_v5 }
 0x16a   : > { %769 = vmatpush1.bf16.msra.mxu1 %v768_v32 }
 0x16b   : > { %770 = vmatprep.subr.bf16.mxu1 %v801_v5 }
 0x16e   : > { %772 = vmatpush1.bf16.msra.mxu1 %v771_v35 }
 0x16f   : > { %773 = vmatprep.subr.bf16.mxu1 %v801_v5 }
 0x172   : > { %775 = vmatpush1.bf16.msra.mxu1 %v774_v38 }
 0x1bc   : > { %v343_v56 = vpop.permute.xlu0 %342 }
 0x1bd   : > { %v355_v58 = vsel %vm283_vm0, %v335_v57, %v343_v56 }
 0x1c0   : > { %v345_v55 = vpop.permute.xlu1 %344 }
 0x1c1   : > { %v356_v61 = vsel %vm283_vm0, %v332_v53, %v345_v55 }
 0x1c4   : > { %v350_v59 = vpop.permute.xlu1 %349 }
 0x1c5   : > { %v358_v60 = vsel %vm357_vm3, %v355_v58, %v350_v59  ;;  %v668_v58 = vld [vmem:[%s1028_s6] ss:$0 sm:$0xff] }
 0x1c6   : > { %713 = vmatprep.mubr.msk.f32.mxu0 %vm379_vm4, %v358_v60 }
 0x1c8   : > { %v352_v62 = vpop.permute.xlu1 %351 }
 0x1c9   : > { %v359_v63 = vsel %vm357_vm3, %v356_v61, %v352_v62 }
 0x1ca   : > { %714 = vmatmul.mubr.msk.f32.vlgmr.msra.gmra.mrb[0].mxu0 %vm379_vm4, %v359_v63 }
 0x29d   : > { %v715_v40 = vpop.f32.mrb[0].mxu0 }
 0x29e   : > { %v458_v41 = vadd.f32 %v715_v40, %v665_v39  ;;  %v452_v42 = vpop.f32.mrb[1].mxu0 }
 0x29f   : > { %v453_v43 = vadd.f32 %v665_v39, %v452_v42 }
 0x2a0   : > { %v462_v44 = vmax.f32 %v458_v41, 0.0 }
 0x2a1   : > { %v461_v45 = vmax.f32 %v453_v43, 0.0 }
 0x2a2   : > { %v466_v46 = vrot.slane %v462_v44, 7  ;;  %478 = vrot.lane.b32.xlu1 %v462_v44, %s800_s16  ;;  %v472_v47 = vrot.slane %v462_v44, 1 }
 0x2a3   : > { %v465_v48 = vrot.slane %v461_v45, 7  ;;  %476 = vrot.lane.b32.xlu0 %v461_v45, %s800_s16  ;;  %v471_v49 = vrot.slane %v461_v45, 1 }
 0x2a4   : > { %v475_v56 = vsel %vm336_vm1, %v472_v47, 0.0 }
 0x2a5   : > { %v473_v50 = vsel %vm336_vm1, %v471_v49, %v472_v47  ;;  %v467_v51 = vsel %vm329_vm2, %v465_v48, %v466_v46  ;;  %v470_v53 = vsel %vm329_vm2, 0.0, %v465_v48 }
 0x2a6   : > { %669 = vmatprep.mubr.msk.f32.mxu1 %vm357_vm3, %v473_v50 }
 0x314   : > { %v479_v55 = vpop.permute.xlu1 %478 }
 0x315   : > { %v477_v52 = vpop.permute.xlu0 %476  ;;  %v483_v57 = vsel %vm357_vm3, %v467_v51, %v479_v55 }
 0x316   : > { %v482_v54 = vsel %vm357_vm3, %v470_v53, %v477_v52 }
 0x317   : > { %585 = vmatmul.mubr.f32.vlgmr.msra.gmra.mrb[0].mxu1 %v482_v54 }
 0x318   : > { %670 = vmatprep.mubr.msk.f32.mxu1 %vm357_vm3, %v475_v56 }
 0x31b   : > { %590 = vmatmul.mubr.f32.gmra.mrb[2].mxu1 %v483_v57 }
 0x3ea   : > { %v586_v59 = vpop.f32.mrb[0].mxu1 }
 0x3eb   : > { %v587_v60 = vadd.f32 %v668_v58, %v586_v59  ;;  %v588_v61 = vpop.f32.mrb[1].mxu1 }
 0x3ed   : > { %v595_v62 = vadd.f32 %v587_v60, %v858_v0 }
 0x3ee   : > { %v591_v63 = vpop.f32.mrb[2].mxu1 }
 0x3ef   : > { %597 = vst.msk [vmem:[%s278_s12] sm:$0xff] %vm283_vm0, %v595_v62  ;;  %v592_v2 = vadd.f32 %v668_v58, %v591_v63  ;;  %v593_v3 = vpop.f32.mrb[3].mxu1 }
 0x3f1   : > { %v596_v4 = vadd.f32 %v592_v2, %v860_v1 }
 0x3f3   : > { %598 = vst.msk [vmem:[%s278_s12 + $0x8] sm:$0xff] %vm283_vm0, %v596_v4 }
 0x3f4 PF: > { %s17_s24 = sadd.s32 1, %s797_s24  }
 0x3f5   : > { %p14_p4 = scmp.ge.s32.totalorder %s17_s24, 4  }
 0x3f7   :  { %16 = sbr.rel (!%p14_p4) target bundleno = 1 (0x1), region = 78 }

</bundles_post_ra>
